<compile_context>
chip_gen: v5e
topology: v5e:2x2
jax: 0.10.0
libtpu: 0.0.40
codegen_flags: <defaults>
</compile_context>

<pallas_src>
import functools

import jax
import jax.numpy as jnp
from jax import lax
from jax.experimental import pallas as pl
from jax.experimental.pallas import tpu as pltpu

EPS = 1e-5  # nn.BatchNorm2d default


def resblock_kernel(xph_ref, w1_ref, w2t_ref, g1_ref, b1_ref, g2_ref, b2_ref,
                    res_ref, out_ref, p1_scr, p2_scr, pad2_scr,
                    *, stride, Ho, Wo):
    """ResidualBlock forward.

    xph_ref : (s*s, N, Hph, Wph, Cin)  phase-decomposed padded input (1x data)
    w1_ref  : (9*Cin, Cout)            conv1 weights, K-folded (tap-major)
    w2t_ref : (Cout, 9*Cout)           conv2 weights, K-folded + transposed
    g1,b1   : (1, Cout)                BN1 affine
    g2,b2   : (Cout, 1)                BN2 affine
    res_ref : (Cin, M)                 skip residual (pooled, NOT channel-padded)
    out_ref : (Cout, M)                lane-dense output, M = N*Ho*Wo
    p1_scr  : (M, 9*Cin)   VMEM        conv1 im2col patch
    p2_scr  : (M, 9*Cout)  VMEM        conv2 im2col patch
    pad2_scr: (N, Ho+2, Wo+2, Cout)    conv2 zero-padded activation
    """
    s = stride
    _, N, _, _, Cin = xph_ref.shape
    Cout = w1_ref.shape[-1]
    M = N * Ho * Wo
    inv_m = 1.0 / M

    # ---- conv1: K-folded im2col -> ONE MXU matmul (K = 9*Cin) -------------
    for dy in range(3):
        for dx in range(3):
            t = dy * 3 + dx
            phase = (dy % s) * s + (dx % s)
            oy, ox = dy // s, dx // s
            tap = xph_ref[phase, :, oy:oy + Ho, ox:ox + Wo, :]  # (N,Ho,Wo,Cin)
            p1_scr[:, t * Cin:(t + 1) * Cin] = tap.reshape(M, Cin)
    acc1 = jnp.dot(p1_scr[...], w1_ref[...],
                   preferred_element_type=jnp.float32)          # (M, Cout)

    # ---- BN1 (single-pass stats, folded scale/shift) + ReLU ---------------
    mu1 = jnp.sum(acc1, axis=0, keepdims=True) * inv_m
    ex1 = jnp.sum(acc1 * acc1, axis=0, keepdims=True) * inv_m
    var1 = ex1 - mu1 * mu1
    scale1 = g1_ref[...] * lax.rsqrt(var1 + EPS)                # (1, Cout)
    shift1 = b1_ref[...] - mu1 * scale1
    y1 = jnp.maximum(acc1 * scale1 + shift1, 0.0)               # (M, Cout)

    # ---- conv2 padded activation: zero only the 1-px halo -----------------
    zrow = jnp.zeros((N, 1, Wo + 2, Cout), jnp.float32)
    zcol = jnp.zeros((N, Ho + 2, 1, Cout), jnp.float32)
    pad2_scr[:, 0:1, :, :] = zrow
    pad2_scr[:, Ho + 1:Ho + 2, :, :] = zrow
    pad2_scr[:, :, 0:1, :] = zcol
    pad2_scr[:, :, Wo + 1:Wo + 2, :] = zcol
    pad2_scr[:, 1:1 + Ho, 1:1 + Wo, :] = y1.reshape(N, Ho, Wo, Cout)

    # ---- conv2: K-folded im2col -> ONE transposed matmul -> (Cout, M) -----
    for dy in range(3):
        for dx in range(3):
            t = dy * 3 + dx
            tap = pad2_scr[:, dy:dy + Ho, dx:dx + Wo, :]        # (N,Ho,Wo,Cout)
            p2_scr[:, t * Cout:(t + 1) * Cout] = tap.reshape(M, Cout)
    acc2t = lax.dot_general(                                    # (Cout, M)
        w2t_ref[...], p2_scr[...],
        dimension_numbers=(((1,), (1,)), ((), ())),
        preferred_element_type=jnp.float32)

    # ---- BN2 + skip add (first Cin rows) + ReLU: fully lane-dense ---------
    mu2 = jnp.sum(acc2t, axis=1, keepdims=True) * inv_m
    ex2 = jnp.sum(acc2t * acc2t, axis=1, keepdims=True) * inv_m
    var2 = ex2 - mu2 * mu2
    scale2 = g2_ref[...] * lax.rsqrt(var2 + EPS)                # (Cout, 1)
    shift2 = b2_ref[...] - mu2 * scale2
    y2 = acc2t * scale2 + shift2                                # (Cout, M)

    Cin_r = res_ref.shape[0]
    out_ref[0:Cin_r, :] = jnp.maximum(
        y2[0:Cin_r, :] + res_ref[...], 0.0).astype(out_ref.dtype)
    if Cout > Cin_r:
        out_ref[Cin_r:, :] = jnp.maximum(
            y2[Cin_r:, :], 0.0).astype(out_ref.dtype)


def _padded_bytes(shape, itemsize=4):
    """VMEM footprint of a buffer after (8,128) tiling of the last two dims."""
    shape = tuple(int(d) for d in shape)
    if not shape:
        return itemsize
    if len(shape) == 1:
        shape = (1, shape[0])
    lead = 1
    for d in shape[:-2]:
        lead *= d
    sub = -(-shape[-2] // 8) * 8
    lane = -(-shape[-1] // 128) * 128
    return lead * sub * lane * itemsize


def residual_block_forward(x_nchw, params, stride):
    """x_nchw: (N, Cin, H, W) float32.  Returns (N, Cout, Ho, Wo)."""
    w1 = params["w1"]   # (3, 3, Cin, Cout)  HWIO
    w2 = params["w2"]   # (3, 3, Cout, Cout) HWIO
    g1, b1 = params["g1"], params["b1"]
    g2, b2 = params["g2"], params["b2"]

    N, Cin, H, W = x_nchw.shape
    Cout = w1.shape[-1]
    s = int(stride)
    Ho = (H + 2 - 3) // s + 1
    Wo = (W + 2 - 3) // s + 1
    M = N * Ho * Wo

    x = jnp.transpose(x_nchw, (0, 2, 3, 1))                # NHWC
    xp = jnp.pad(x, ((0, 0), (1, 1), (1, 1), (0, 0)))      # spatial pad 1
    Hp, Wp = H + 2, W + 2

    # Phase (space-to-depth) decomposition: same data volume as xp, lets the
    # kernel read every strided conv1 tap as a plain contiguous slice.
    Hph, Wph = -(-Hp // s), -(-Wp // s)
    xp2 = jnp.pad(xp, ((0, 0), (0, s * Hph - Hp), (0, s * Wph - Wp), (0, 0)))
    xph = (xp2.reshape(N, Hph, s, Wph, s, Cin)
              .transpose(2, 4, 0, 1, 3, 5)
              .reshape(s * s, N, Hph, Wph, Cin))

    # Skip branch: Identity / AvgPool2d(s) done here (cheap); NOT channel-padded.
    if s > 1:
        res = lax.reduce_window(x, 0.0, lax.add, (1, s, s, 1), (1, s, s, 1),
                                "VALID") / float(s * s)
    else:
        res = x
    assert res.shape[1] == Ho and res.shape[2] == Wo, res.shape
    res_t = jnp.transpose(res, (3, 0, 1, 2)).reshape(Cin, M)   # (Cin, M)

    w1r = w1.reshape(9 * Cin, Cout)                # K-folded conv1 weights
    w2t = w2.reshape(9 * Cout, Cout).T             # (Cout, 9*Cout)
    g1r, b1r = g1.reshape(1, Cout), b1.reshape(1, Cout)
    g2r, b2r = g2.reshape(Cout, 1), b2.reshape(Cout, 1)

    in_shapes = [xph.shape, w1r.shape, w2t.shape, g1r.shape, b1r.shape,
                 g2r.shape, b2r.shape, res_t.shape]
    scratch_shapes = [(M, 9 * Cin), (M, 9 * Cout), (N, Ho + 2, Wo + 2, Cout)]
    resident = sum(_padded_bytes(sh) for sh in
                   in_shapes + scratch_shapes + [(Cout, M)])
    vmem_limit = int(min(max(2 * resident + (8 << 20), 16 << 20), 64 << 20))

    kernel = functools.partial(resblock_kernel, stride=s, Ho=Ho, Wo=Wo)
    vmem = pl.BlockSpec(memory_space=pltpu.MemorySpace.VMEM)

    out_t = pl.pallas_call(
        kernel,
        out_shape=jax.ShapeDtypeStruct((Cout, M), x.dtype),
        in_specs=[vmem] * 8,
        out_specs=vmem,
        scratch_shapes=[
            pltpu.VMEM((M, 9 * Cin), jnp.float32),
            pltpu.VMEM((M, 9 * Cout), jnp.float32),
            pltpu.VMEM((N, Ho + 2, Wo + 2, Cout), jnp.float32),
        ],
        compiler_params=pltpu.CompilerParams(vmem_limit_bytes=vmem_limit),
    )(xph, w1r, w2t, g1r, b1r, g2r, b2r, res_t)

    return out_t.reshape(Cout, N, Ho, Wo).transpose(1, 0, 2, 3)  # NCHW


def reference_forward(x_nchw, params, stride):
    """Pure-JAX reference of the PyTorch module's forward (training-mode BN)."""
    w1 = jnp.transpose(params["w1"], (3, 2, 0, 1))  # OIHW
    w2 = jnp.transpose(params["w2"], (3, 2, 0, 1))
    Cin = x_nchw.shape[1]
    Cout = w1.shape[0]

    def conv(z, w, st):
        return lax.conv_general_dilated(
            z, w, (st, st), ((1, 1), (1, 1)),
            dimension_numbers=("NCHW", "OIHW", "NCHW"))

    def bn(z, g, b):
        mu = jnp.mean(z, axis=(0, 2, 3), keepdims=True)
        var = jnp.mean((z - mu) ** 2, axis=(0, 2, 3), keepdims=True)
        return ((z - mu) * lax.rsqrt(var + EPS) * g.reshape(1, -1, 1, 1)
                + b.reshape(1, -1, 1, 1))

    y = jnp.maximum(bn(conv(x_nchw, w1, stride), params["g1"], params["b1"]), 0.0)
    y = bn(conv(y, w2, 1), params["g2"], params["b2"])

    res = x_nchw
    if stride > 1:
        res = lax.reduce_window(res, 0.0, lax.add,
                                (1, 1, stride, stride), (1, 1, stride, stride),
                                "VALID") / float(stride * stride)
    if Cout > Cin:
        res = jnp.pad(res, ((0, 0), (0, Cout - Cin), (0, 0), (0, 0)))
    return jnp.maximum(y + res, 0.0)


def _make_params(key, cin, cout):
    k1, k2, kg1, kb1, kg2, kb2 = jax.random.split(key, 6)
    return {
        "w1": 0.2 * jax.random.normal(k1, (3, 3, cin, cout), jnp.float32),
        "w2": 0.2 * jax.random.normal(k2, (3, 3, cout, cout), jnp.float32),
        "g1": 1.0 + 0.1 * jax.random.normal(kg1, (cout,), jnp.float32),
        "b1": 0.1 * jax.random.normal(kb1, (cout,), jnp.float32),
        "g2": 1.0 + 0.1 * jax.random.normal(kg2, (cout,), jnp.float32),
        "b2": 0.1 * jax.random.normal(kb2, (cout,), jnp.float32),
    }


if __name__ == "__main__":
    key = jax.random.PRNGKey(0)
    kx1, kp1, kx2, kp2 = jax.random.split(key, 4)

    # Case 1: ResidualBlock(in_channels=4, out_channels=8, dropout=0.1, stride=2)
    x1 = jax.random.normal(kx1, (2, 4, 16, 16), jnp.float32)
    prm1 = _make_params(kp1, 4, 8)
    fwd2 = jax.jit(functools.partial(residual_block_forward, stride=2))
    out1 = fwd2(x1, prm1)
    jax.block_until_ready(out1)
    ref1 = reference_forward(x1, prm1, 2)
    assert out1.shape == (2, 8, 8, 8), out1.shape
    assert jnp.allclose(out1, ref1, atol=1e-3, rtol=1e-3), float(
        jnp.max(jnp.abs(out1 - ref1)))

    # Case 2: ResidualBlock(in_channels=8, out_channels=8, dropout=0.1, stride=1)
    x2 = jax.random.normal(kx2, (2, 8, 8, 8), jnp.float32)
    prm2 = _make_params(kp2, 8, 8)
    fwd1 = jax.jit(functools.partial(residual_block_forward, stride=1))
    out2 = fwd1(x2, prm2)
    jax.block_until_ready(out2)
    ref2 = reference_forward(x2, prm2, 1)
    assert out2.shape == (2, 8, 8, 8), out2.shape
    assert jnp.allclose(out2, ref2, atol=1e-3, rtol=1e-3), float(
        jnp.max(jnp.abs(out2 - ref2)))

    print("KERNEL_OK")
</pallas_src>

<mosaic_0001>
module attributes {stable_mosaic.version = 11 : i64} {
  func.func @resblock_kernel(%arg0: memref<4x2x9x9x4xf32, #tpu.memory_space<vmem>>, %arg1: memref<36x8xf32, #tpu.memory_space<vmem>>, %arg2: memref<8x72xf32, #tpu.memory_space<vmem>>, %arg3: memref<1x8xf32, #tpu.memory_space<vmem>>, %arg4: memref<1x8xf32, #tpu.memory_space<vmem>>, %arg5: memref<8x1xf32, #tpu.memory_space<vmem>>, %arg6: memref<8x1xf32, #tpu.memory_space<vmem>>, %arg7: memref<4x128xf32, #tpu.memory_space<vmem>>, %arg8: memref<8x128xf32, #tpu.memory_space<vmem>>, %arg9: memref<128x36xf32, #tpu.memory_space<vmem>>, %arg10: memref<128x72xf32, #tpu.memory_space<vmem>>, %arg11: memref<2x10x10x8xf32, #tpu.memory_space<vmem>>) attributes {dimension_semantics = [], scalar_prefetch = 0 : i64, scratch_operands = 3 : i64, tpu.core_type = #tpu.core_type<tc>} {
    %c0 = arith.constant 0 : index
    %c0_0 = arith.constant 0 : index
    %c0_1 = arith.constant 0 : index
    %c0_2 = arith.constant 0 : index
    %c0_3 = arith.constant 0 : index
    %0 = vector.load %arg0[%c0, %c0_0, %c0_1, %c0_2, %c0_3] : memref<4x2x9x9x4xf32, #tpu.memory_space<vmem>>, vector<1x2x8x8x4xf32>
    %1 = vector.shape_cast %0 : vector<1x2x8x8x4xf32> to vector<2x8x8x4xf32>
    %2 = vector.shape_cast %1 : vector<2x8x8x4xf32> to vector<128x4xf32>
    %c0_4 = arith.constant 0 : index
    %c0_5 = arith.constant 0 : index
    %3 = vector.load %arg9[%c0_4, %c0_5] : memref<128x36xf32, #tpu.memory_space<vmem>>, vector<128x4xf32>
    tpu.vector_store %arg9[%c0_4, %c0_5], %2 {strides = array<i32>} : memref<128x36xf32, #tpu.memory_space<vmem>>, vector<128x4xf32>,
    %c1 = arith.constant 1 : index
    %c0_6 = arith.constant 0 : index
    %c0_7 = arith.constant 0 : index
    %c0_8 = arith.constant 0 : index
    %c0_9 = arith.constant 0 : index
    %4 = vector.load %arg0[%c1, %c0_6, %c0_7, %c0_8, %c0_9] : memref<4x2x9x9x4xf32, #tpu.memory_space<vmem>>, vector<1x2x8x8x4xf32>
    %5 = vector.shape_cast %4 : vector<1x2x8x8x4xf32> to vector<2x8x8x4xf32>
    %6 = vector.shape_cast %5 : vector<2x8x8x4xf32> to vector<128x4xf32>
    %c0_10 = arith.constant 0 : index
    %c4 = arith.constant 4 : index
    %7 = vector.load %arg9[%c0_10, %c4] : memref<128x36xf32, #tpu.memory_space<vmem>>, vector<128x4xf32>
    tpu.vector_store %arg9[%c0_10, %c4], %6 {strides = array<i32>} : memref<128x36xf32, #tpu.memory_space<vmem>>, vector<128x4xf32>,
    %c0_11 = arith.constant 0 : index
    %c0_12 = arith.constant 0 : index
    %c0_13 = arith.constant 0 : index
    %c1_14 = arith.constant 1 : index
    %c0_15 = arith.constant 0 : index
    %8 = vector.load %arg0[%c0_11, %c0_12, %c0_13, %c1_14, %c0_15] : memref<4x2x9x9x4xf32, #tpu.memory_space<vmem>>, vector<1x2x8x8x4xf32>
    %9 = vector.shape_cast %8 : vector<1x2x8x8x4xf32> to vector<2x8x8x4xf32>
    %10 = vector.shape_cast %9 : vector<2x8x8x4xf32> to vector<128x4xf32>
    %c0_16 = arith.constant 0 : index
    %c8 = arith.constant 8 : index
    %11 = vector.load %arg9[%c0_16, %c8] : memref<128x36xf32, #tpu.memory_space<vmem>>, vector<128x4xf32>
    tpu.vector_store %arg9[%c0_16, %c8], %10 {strides = array<i32>} : memref<128x36xf32, #tpu.memory_space<vmem>>, vector<128x4xf32>,
    %c2 = arith.constant 2 : index
    %c0_17 = arith.constant 0 : index
    %c0_18 = arith.constant 0 : index
    %c0_19 = arith.constant 0 : index
    %c0_20 = arith.constant 0 : index
    %12 = vector.load %arg0[%c2, %c0_17, %c0_18, %c0_19, %c0_20] : memref<4x2x9x9x4xf32, #tpu.memory_space<vmem>>, vector<1x2x8x8x4xf32>
    %13 = vector.shape_cast %12 : vector<1x2x8x8x4xf32> to vector<2x8x8x4xf32>
    %14 = vector.shape_cast %13 : vector<2x8x8x4xf32> to vector<128x4xf32>
    %c0_21 = arith.constant 0 : index
    %c12 = arith.constant 12 : index
    %15 = vector.load %arg9[%c0_21, %c12] : memref<128x36xf32, #tpu.memory_space<vmem>>, vector<128x4xf32>
    tpu.vector_store %arg9[%c0_21, %c12], %14 {strides = array<i32>} : memref<128x36xf32, #tpu.memory_space<vmem>>, vector<128x4xf32>,
    %c3 = arith.constant 3 : index
    %c0_22 = arith.constant 0 : index
    %c0_23 = arith.constant 0 : index
    %c0_24 = arith.constant 0 : index
    %c0_25 = arith.constant 0 : index
    %16 = vector.load %arg0[%c3, %c0_22, %c0_23, %c0_24, %c0_25] : memref<4x2x9x9x4xf32, #tpu.memory_space<vmem>>, vector<1x2x8x8x4xf32>
    %17 = vector.shape_cast %16 : vector<1x2x8x8x4xf32> to vector<2x8x8x4xf32>
    %18 = vector.shape_cast %17 : vector<2x8x8x4xf32> to vector<128x4xf32>
    %c0_26 = arith.constant 0 : index
    %c16 = arith.constant 16 : index
    %19 = vector.load %arg9[%c0_26, %c16] : memref<128x36xf32, #tpu.memory_space<vmem>>, vector<128x4xf32>
    tpu.vector_store %arg9[%c0_26, %c16], %18 {strides = array<i32>} : memref<128x36xf32, #tpu.memory_space<vmem>>, vector<128x4xf32>,
    %c2_27 = arith.constant 2 : index
    %c0_28 = arith.constant 0 : index
    %c0_29 = arith.constant 0 : index
    %c1_30 = arith.constant 1 : index
    %c0_31 = arith.constant 0 : index
    %20 = vector.load %arg0[%c2_27, %c0_28, %c0_29, %c1_30, %c0_31] : memref<4x2x9x9x4xf32, #tpu.memory_space<vmem>>, vector<1x2x8x8x4xf32>
    %21 = vector.shape_cast %20 : vector<1x2x8x8x4xf32> to vector<2x8x8x4xf32>
    %22 = vector.shape_cast %21 : vector<2x8x8x4xf32> to vector<128x4xf32>
    %c0_32 = arith.constant 0 : index
    %c20 = arith.constant 20 : index
    %23 = vector.load %arg9[%c0_32, %c20] : memref<128x36xf32, #tpu.memory_space<vmem>>, vector<128x4xf32>
    tpu.vector_store %arg9[%c0_32, %c20], %22 {strides = array<i32>} : memref<128x36xf32, #tpu.memory_space<vmem>>, vector<128x4xf32>,
    %c0_33 = arith.constant 0 : index
    %c0_34 = arith.constant 0 : index
    %c1_35 = arith.constant 1 : index
    %c0_36 = arith.constant 0 : index
    %c0_37 = arith.constant 0 : index
    %24 = vector.load %arg0[%c0_33, %c0_34, %c1_35, %c0_36, %c0_37] : memref<4x2x9x9x4xf32, #tpu.memory_space<vmem>>, vector<1x2x8x8x4xf32>
    %25 = vector.shape_cast %24 : vector<1x2x8x8x4xf32> to vector<2x8x8x4xf32>
    %26 = vector.shape_cast %25 : vector<2x8x8x4xf32> to vector<128x4xf32>
    %c0_38 = arith.constant 0 : index
    %c24 = arith.constant 24 : index
    %27 = vector.load %arg9[%c0_38, %c24] : memref<128x36xf32, #tpu.memory_space<vmem>>, vector<128x4xf32>
    tpu.vector_store %arg9[%c0_38, %c24], %26 {strides = array<i32>} : memref<128x36xf32, #tpu.memory_space<vmem>>, vector<128x4xf32>,
    %c1_39 = arith.constant 1 : index
    %c0_40 = arith.constant 0 : index
    %c1_41 = arith.constant 1 : index
    %c0_42 = arith.constant 0 : index
    %c0_43 = arith.constant 0 : index
    %28 = vector.load %arg0[%c1_39, %c0_40, %c1_41, %c0_42, %c0_43] : memref<4x2x9x9x4xf32, #tpu.memory_space<vmem>>, vector<1x2x8x8x4xf32>
    %29 = vector.shape_cast %28 : vector<1x2x8x8x4xf32> to vector<2x8x8x4xf32>
    %30 = vector.shape_cast %29 : vector<2x8x8x4xf32> to vector<128x4xf32>
    %c0_44 = arith.constant 0 : index
    %c28 = arith.constant 28 : index
    %31 = vector.load %arg9[%c0_44, %c28] : memref<128x36xf32, #tpu.memory_space<vmem>>, vector<128x4xf32>
    tpu.vector_store %arg9[%c0_44, %c28], %30 {strides = array<i32>} : memref<128x36xf32, #tpu.memory_space<vmem>>, vector<128x4xf32>,
    %c0_45 = arith.constant 0 : index
    %c0_46 = arith.constant 0 : index
    %c1_47 = arith.constant 1 : index
    %c1_48 = arith.constant 1 : index
    %c0_49 = arith.constant 0 : index
    %32 = vector.load %arg0[%c0_45, %c0_46, %c1_47, %c1_48, %c0_49] : memref<4x2x9x9x4xf32, #tpu.memory_space<vmem>>, vector<1x2x8x8x4xf32>
    %33 = vector.shape_cast %32 : vector<1x2x8x8x4xf32> to vector<2x8x8x4xf32>
    %34 = vector.shape_cast %33 : vector<2x8x8x4xf32> to vector<128x4xf32>
    %c0_50 = arith.constant 0 : index
    %c32 = arith.constant 32 : index
    %35 = vector.load %arg9[%c0_50, %c32] : memref<128x36xf32, #tpu.memory_space<vmem>>, vector<128x4xf32>
    tpu.vector_store %arg9[%c0_50, %c32], %34 {strides = array<i32>} : memref<128x36xf32, #tpu.memory_space<vmem>>, vector<128x4xf32>,
    %c0_51 = arith.constant 0 : index
    %c0_52 = arith.constant 0 : index
    %36 = vector.load %arg9[%c0_51, %c0_52] : memref<128x36xf32, #tpu.memory_space<vmem>>, vector<128x36xf32>
    %c0_53 = arith.constant 0 : index
    %c0_54 = arith.constant 0 : index
    %37 = vector.load %arg1[%c0_53, %c0_54] : memref<36x8xf32, #tpu.memory_space<vmem>>, vector<36x8xf32>
    %cst = arith.constant dense<0.000000e+00> : vector<128x8xf32>
    %38 = tpu.matmul %36, %37, %cst {dimension_numbers = #tpu.dot_dimension_numbers<[1], [0], [0], [1], [0, 0, 1, 1], [], []>} : vector<128x36xf32>, vector<36x8xf32>, vector<128x8xf32> -> vector<128x8xf32>
    %cst_55 = arith.constant dense<0.000000e+00> : vector<8xf32>
    %39 = vector.multi_reduction <add>, %38, %cst_55 [0] : vector<128x8xf32> to vector<8xf32>
    %40 = vector.shape_cast %39 : vector<8xf32> to vector<1x8xf32>
    %cst_56 = arith.constant 7.812500e-03 : f32
    %41 = vector.broadcast %cst_56 : f32 to vector<1x8xf32>
    %42 = arith.mulf %40, %41 : vector<1x8xf32>
    %43 = arith.mulf %38, %38 : vector<128x8xf32>
    %cst_57 = arith.constant dense<0.000000e+00> : vector<8xf32>
    %44 = vector.multi_reduction <add>, %43, %cst_57 [0] : vector<128x8xf32> to vector<8xf32>
    %45 = vector.shape_cast %44 : vector<8xf32> to vector<1x8xf32>
    %cst_58 = arith.constant 7.812500e-03 : f32
    %46 = vector.broadcast %cst_58 : f32 to vector<1x8xf32>
    %47 = arith.mulf %45, %46 : vector<1x8xf32>
    %48 = arith.mulf %42, %42 : vector<1x8xf32>
    %49 = arith.subf %47, %48 : vector<1x8xf32>
    %c0_59 = arith.constant 0 : index
    %c0_60 = arith.constant 0 : index
    %50 = vector.load %arg3[%c0_59, %c0_60] : memref<1x8xf32, #tpu.memory_space<vmem>>, vector<1x8xf32>
    %cst_61 = arith.constant 9.99999974E-6 : f32
    %51 = vector.broadcast %cst_61 : f32 to vector<1x8xf32>
    %52 = arith.addf %49, %51 : vector<1x8xf32>
    %53 = math.rsqrt %52 : vector<1x8xf32>
    %54 = arith.mulf %50, %53 : vector<1x8xf32>
    %c0_62 = arith.constant 0 : index
    %c0_63 = arith.constant 0 : index
    %55 = vector.load %arg4[%c0_62, %c0_63] : memref<1x8xf32, #tpu.memory_space<vmem>>, vector<1x8xf32>
    %56 = arith.mulf %42, %54 : vector<1x8xf32>
    %57 = arith.subf %55, %56 : vector<1x8xf32>
    %58 = vector.broadcast %54 : vector<1x8xf32> to vector<128x8xf32>
    %59 = arith.mulf %38, %58 : vector<128x8xf32>
    %60 = vector.broadcast %57 : vector<1x8xf32> to vector<128x8xf32>
    %61 = arith.addf %59, %60 : vector<128x8xf32>
    %cst_64 = arith.constant 0.000000e+00 : f32
    %62 = vector.broadcast %cst_64 : f32 to vector<128x8xf32>
    %63 = arith.maximumf %61, %62 : vector<128x8xf32>
    %cst_65 = arith.constant 0.000000e+00 : f32
    %64 = vector.broadcast %cst_65 : f32 to vector<2x1x10x8xf32>
    %cst_66 = arith.constant 0.000000e+00 : f32
    %65 = vector.broadcast %cst_66 : f32 to vector<2x10x1x8xf32>
    %c0_67 = arith.constant 0 : index
    %c0_68 = arith.constant 0 : index
    %c0_69 = arith.constant 0 : index
    %c0_70 = arith.constant 0 : index
    %66 = vector.load %arg11[%c0_67, %c0_68, %c0_69, %c0_70] : memref<2x10x10x8xf32, #tpu.memory_space<vmem>>, vector<2x1x10x8xf32>
    tpu.vector_store %arg11[%c0_67, %c0_68, %c0_69, %c0_70], %64 {strides = array<i32>} : memref<2x10x10x8xf32, #tpu.memory_space<vmem>>, vector<2x1x10x8xf32>,
    %c0_71 = arith.constant 0 : index
    %c9 = arith.constant 9 : index
    %c0_72 = arith.constant 0 : index
    %c0_73 = arith.constant 0 : index
    %67 = vector.load %arg11[%c0_71, %c9, %c0_72, %c0_73] : memref<2x10x10x8xf32, #tpu.memory_space<vmem>>, vector<2x1x10x8xf32>
    tpu.vector_store %arg11[%c0_71, %c9, %c0_72, %c0_73], %64 {strides = array<i32>} : memref<2x10x10x8xf32, #tpu.memory_space<vmem>>, vector<2x1x10x8xf32>,
    %c0_74 = arith.constant 0 : index
    %c0_75 = arith.constant 0 : index
    %c0_76 = arith.constant 0 : index
    %c0_77 = arith.constant 0 : index
    %68 = vector.load %arg11[%c0_74, %c0_75, %c0_76, %c0_77] : memref<2x10x10x8xf32, #tpu.memory_space<vmem>>, vector<2x10x1x8xf32>
    tpu.vector_store %arg11[%c0_74, %c0_75, %c0_76, %c0_77], %65 {strides = array<i32>} : memref<2x10x10x8xf32, #tpu.memory_space<vmem>>, vector<2x10x1x8xf32>,
    %c0_78 = arith.constant 0 : index
    %c0_79 = arith.constant 0 : index
    %c9_80 = arith.constant 9 : index
    %c0_81 = arith.constant 0 : index
    %69 = vector.load %arg11[%c0_78, %c0_79, %c9_80, %c0_81] : memref<2x10x10x8xf32, #tpu.memory_space<vmem>>, vector<2x10x1x8xf32>
    tpu.vector_store %arg11[%c0_78, %c0_79, %c9_80, %c0_81], %65 {strides = array<i32>} : memref<2x10x10x8xf32, #tpu.memory_space<vmem>>, vector<2x10x1x8xf32>,
    %70 = vector.shape_cast %63 : vector<128x8xf32> to vector<2x8x8x8xf32>
    %c0_82 = arith.constant 0 : index
    %c1_83 = arith.constant 1 : index
    %c1_84 = arith.constant 1 : index
    %c0_85 = arith.constant 0 : index
    %71 = vector.load %arg11[%c0_82, %c1_83, %c1_84, %c0_85] : memref<2x10x10x8xf32, #tpu.memory_space<vmem>>, vector<2x8x8x8xf32>
    tpu.vector_store %arg11[%c0_82, %c1_83, %c1_84, %c0_85], %70 {strides = array<i32>} : memref<2x10x10x8xf32, #tpu.memory_space<vmem>>, vector<2x8x8x8xf32>,
    %c0_86 = arith.constant 0 : index
    %c0_87 = arith.constant 0 : index
    %c0_88 = arith.constant 0 : index
    %c0_89 = arith.constant 0 : index
    %72 = vector.load %arg11[%c0_86, %c0_87, %c0_88, %c0_89] : memref<2x10x10x8xf32, #tpu.memory_space<vmem>>, vector<2x8x8x8xf32>
    %73 = vector.shape_cast %72 : vector<2x8x8x8xf32> to vector<128x8xf32>
    %c0_90 = arith.constant 0 : index
    %c0_91 = arith.constant 0 : index
    %74 = vector.load %arg10[%c0_90, %c0_91] : memref<128x72xf32, #tpu.memory_space<vmem>>, vector<128x8xf32>
    tpu.vector_store %arg10[%c0_90, %c0_91], %73 {strides = array<i32>} : memref<128x72xf32, #tpu.memory_space<vmem>>, vector<128x8xf32>,
    %c0_92 = arith.constant 0 : index
    %c0_93 = arith.constant 0 : index
    %c1_94 = arith.constant 1 : index
    %c0_95 = arith.constant 0 : index
    %75 = vector.load %arg11[%c0_92, %c0_93, %c1_94, %c0_95] : memref<2x10x10x8xf32, #tpu.memory_space<vmem>>, vector<2x8x8x8xf32>
    %76 = vector.shape_cast %75 : vector<2x8x8x8xf32> to vector<128x8xf32>
    %c0_96 = arith.constant 0 : index
    %c8_97 = arith.constant 8 : index
    %77 = vector.load %arg10[%c0_96, %c8_97] : memref<128x72xf32, #tpu.memory_space<vmem>>, vector<128x8xf32>
    tpu.vector_store %arg10[%c0_96, %c8_97], %76 {strides = array<i32>} : memref<128x72xf32, #tpu.memory_space<vmem>>, vector<128x8xf32>,
    %c0_98 = arith.constant 0 : index
    %c0_99 = arith.constant 0 : index
    %c2_100 = arith.constant 2 : index
    %c0_101 = arith.constant 0 : index
    %78 = vector.load %arg11[%c0_98, %c0_99, %c2_100, %c0_101] : memref<2x10x10x8xf32, #tpu.memory_space<vmem>>, vector<2x8x8x8xf32>
    %79 = vector.shape_cast %78 : vector<2x8x8x8xf32> to vector<128x8xf32>
    %c0_102 = arith.constant 0 : index
    %c16_103 = arith.constant 16 : index
    %80 = vector.load %arg10[%c0_102, %c16_103] : memref<128x72xf32, #tpu.memory_space<vmem>>, vector<128x8xf32>
    tpu.vector_store %arg10[%c0_102, %c16_103], %79 {strides = array<i32>} : memref<128x72xf32, #tpu.memory_space<vmem>>, vector<128x8xf32>,
    %c0_104 = arith.constant 0 : index
    %c1_105 = arith.constant 1 : index
    %c0_106 = arith.constant 0 : index
    %c0_107 = arith.constant 0 : index
    %81 = vector.load %arg11[%c0_104, %c1_105, %c0_106, %c0_107] : memref<2x10x10x8xf32, #tpu.memory_space<vmem>>, vector<2x8x8x8xf32>
    %82 = vector.shape_cast %81 : vector<2x8x8x8xf32> to vector<128x8xf32>
    %c0_108 = arith.constant 0 : index
    %c24_109 = arith.constant 24 : index
    %83 = vector.load %arg10[%c0_108, %c24_109] : memref<128x72xf32, #tpu.memory_space<vmem>>, vector<128x8xf32>
    tpu.vector_store %arg10[%c0_108, %c24_109], %82 {strides = array<i32>} : memref<128x72xf32, #tpu.memory_space<vmem>>, vector<128x8xf32>,
    %c0_110 = arith.constant 0 : index
    %c1_111 = arith.constant 1 : index
    %c1_112 = arith.constant 1 : index
    %c0_113 = arith.constant 0 : index
    %84 = vector.load %arg11[%c0_110, %c1_111, %c1_112, %c0_113] : memref<2x10x10x8xf32, #tpu.memory_space<vmem>>, vector<2x8x8x8xf32>
    %85 = vector.shape_cast %84 : vector<2x8x8x8xf32> to vector<128x8xf32>
    %c0_114 = arith.constant 0 : index
    %c32_115 = arith.constant 32 : index
    %86 = vector.load %arg10[%c0_114, %c32_115] : memref<128x72xf32, #tpu.memory_space<vmem>>, vector<128x8xf32>
    tpu.vector_store %arg10[%c0_114, %c32_115], %85 {strides = array<i32>} : memref<128x72xf32, #tpu.memory_space<vmem>>, vector<128x8xf32>,
    %c0_116 = arith.constant 0 : index
    %c1_117 = arith.constant 1 : index
    %c2_118 = arith.constant 2 : index
    %c0_119 = arith.constant 0 : index
    %87 = vector.load %arg11[%c0_116, %c1_117, %c2_118, %c0_119] : memref<2x10x10x8xf32, #tpu.memory_space<vmem>>, vector<2x8x8x8xf32>
    %88 = vector.shape_cast %87 : vector<2x8x8x8xf32> to vector<128x8xf32>
    %c0_120 = arith.constant 0 : index
    %c40 = arith.constant 40 : index
    %89 = vector.load %arg10[%c0_120, %c40] : memref<128x72xf32, #tpu.memory_space<vmem>>, vector<128x8xf32>
    tpu.vector_store %arg10[%c0_120, %c40], %88 {strides = array<i32>} : memref<128x72xf32, #tpu.memory_space<vmem>>, vector<128x8xf32>,
    %c0_121 = arith.constant 0 : index
    %c2_122 = arith.constant 2 : index
    %c0_123 = arith.constant 0 : index
    %c0_124 = arith.constant 0 : index
    %90 = vector.load %arg11[%c0_121, %c2_122, %c0_123, %c0_124] : memref<2x10x10x8xf32, #tpu.memory_space<vmem>>, vector<2x8x8x8xf32>
    %91 = vector.shape_cast %90 : vector<2x8x8x8xf32> to vector<128x8xf32>
    %c0_125 = arith.constant 0 : index
    %c48 = arith.constant 48 : index
    %92 = vector.load %arg10[%c0_125, %c48] : memref<128x72xf32, #tpu.memory_space<vmem>>, vector<128x8xf32>
    tpu.vector_store %arg10[%c0_125, %c48], %91 {strides = array<i32>} : memref<128x72xf32, #tpu.memory_space<vmem>>, vector<128x8xf32>,
    %c0_126 = arith.constant 0 : index
    %c2_127 = arith.constant 2 : index
    %c1_128 = arith.constant 1 : index
    %c0_129 = arith.constant 0 : index
    %93 = vector.load %arg11[%c0_126, %c2_127, %c1_128, %c0_129] : memref<2x10x10x8xf32, #tpu.memory_space<vmem>>, vector<2x8x8x8xf32>
    %94 = vector.shape_cast %93 : vector<2x8x8x8xf32> to vector<128x8xf32>
    %c0_130 = arith.constant 0 : index
    %c56 = arith.constant 56 : index
    %95 = vector.load %arg10[%c0_130, %c56] : memref<128x72xf32, #tpu.memory_space<vmem>>, vector<128x8xf32>
    tpu.vector_store %arg10[%c0_130, %c56], %94 {strides = array<i32>} : memref<128x72xf32, #tpu.memory_space<vmem>>, vector<128x8xf32>,
    %c0_131 = arith.constant 0 : index
    %c2_132 = arith.constant 2 : index
    %c2_133 = arith.constant 2 : index
    %c0_134 = arith.constant 0 : index
    %96 = vector.load %arg11[%c0_131, %c2_132, %c2_133, %c0_134] : memref<2x10x10x8xf32, #tpu.memory_space<vmem>>, vector<2x8x8x8xf32>
    %97 = vector.shape_cast %96 : vector<2x8x8x8xf32> to vector<128x8xf32>
    %c0_135 = arith.constant 0 : index
    %c64 = arith.constant 64 : index
    %98 = vector.load %arg10[%c0_135, %c64] : memref<128x72xf32, #tpu.memory_space<vmem>>, vector<128x8xf32>
    tpu.vector_store %arg10[%c0_135, %c64], %97 {strides = array<i32>} : memref<128x72xf32, #tpu.memory_space<vmem>>, vector<128x8xf32>,
    %c0_136 = arith.constant 0 : index
    %c0_137 = arith.constant 0 : index
    %99 = vector.load %arg2[%c0_136, %c0_137] : memref<8x72xf32, #tpu.memory_space<vmem>>, vector<8x72xf32>
    %c0_138 = arith.constant 0 : index
    %c0_139 = arith.constant 0 : index
    %100 = vector.load %arg10[%c0_138, %c0_139] : memref<128x72xf32, #tpu.memory_space<vmem>>, vector<128x72xf32>
    %cst_140 = arith.constant dense<0.000000e+00> : vector<8x128xf32>
    %101 = tpu.matmul %99, %100, %cst_140 {dimension_numbers = #tpu.dot_dimension_numbers<[1], [1], [0], [0], [0, 0, 1, 0], [], []>} : vector<8x72xf32>, vector<128x72xf32>, vector<8x128xf32> -> vector<8x128xf32>
    %cst_141 = arith.constant dense<0.000000e+00> : vector<8xf32>
    %102 = vector.multi_reduction <add>, %101, %cst_141 [1] : vector<8x128xf32> to vector<8xf32>
    %103 = vector.shape_cast %102 : vector<8xf32> to vector<8x1xf32>
    %cst_142 = arith.constant 7.812500e-03 : f32
    %104 = vector.broadcast %cst_142 : f32 to vector<8x1xf32>
    %105 = arith.mulf %103, %104 : vector<8x1xf32>
    %106 = arith.mulf %101, %101 : vector<8x128xf32>
    %cst_143 = arith.constant dense<0.000000e+00> : vector<8xf32>
    %107 = vector.multi_reduction <add>, %106, %cst_143 [1] : vector<8x128xf32> to vector<8xf32>
    %108 = vector.shape_cast %107 : vector<8xf32> to vector<8x1xf32>
    %cst_144 = arith.constant 7.812500e-03 : f32
    %109 = vector.broadcast %cst_144 : f32 to vector<8x1xf32>
    %110 = arith.mulf %108, %109 : vector<8x1xf32>
    %111 = arith.mulf %105, %105 : vector<8x1xf32>
    %112 = arith.subf %110, %111 : vector<8x1xf32>
    %c0_145 = arith.constant 0 : index
    %c0_146 = arith.constant 0 : index
    %113 = vector.load %arg5[%c0_145, %c0_146] : memref<8x1xf32, #tpu.memory_space<vmem>>, vector<8x1xf32>
    %cst_147 = arith.constant 9.99999974E-6 : f32
    %114 = vector.broadcast %cst_147 : f32 to vector<8x1xf32>
    %115 = arith.addf %112, %114 : vector<8x1xf32>
    %116 = math.rsqrt %115 : vector<8x1xf32>
    %117 = arith.mulf %113, %116 : vector<8x1xf32>
    %c0_148 = arith.constant 0 : index
    %c0_149 = arith.constant 0 : index
    %118 = vector.load %arg6[%c0_148, %c0_149] : memref<8x1xf32, #tpu.memory_space<vmem>>, vector<8x1xf32>
    %119 = arith.mulf %105, %117 : vector<8x1xf32>
    %120 = arith.subf %118, %119 : vector<8x1xf32>
    %121 = vector.broadcast %117 : vector<8x1xf32> to vector<8x128xf32>
    %122 = arith.mulf %101, %121 : vector<8x128xf32>
    %123 = vector.broadcast %120 : vector<8x1xf32> to vector<8x128xf32>
    %124 = arith.addf %122, %123 : vector<8x128xf32>
    %125 = vector.extract_strided_slice %124 {offsets = [0, 0], sizes = [4, 128], strides = [1, 1]} : vector<8x128xf32> to vector<4x128xf32>
    %c0_150 = arith.constant 0 : index
    %c0_151 = arith.constant 0 : index
    %126 = vector.load %arg7[%c0_150, %c0_151] : memref<4x128xf32, #tpu.memory_space<vmem>>, vector<4x128xf32>
    %127 = arith.addf %125, %126 : vector<4x128xf32>
    %cst_152 = arith.constant 0.000000e+00 : f32
    %128 = vector.broadcast %cst_152 : f32 to vector<4x128xf32>
    %129 = arith.maximumf %127, %128 : vector<4x128xf32>
    %c0_153 = arith.constant 0 : index
    %c0_154 = arith.constant 0 : index
    %130 = vector.load %arg8[%c0_153, %c0_154] : memref<8x128xf32, #tpu.memory_space<vmem>>, vector<4x128xf32>
    tpu.vector_store %arg8[%c0_153, %c0_154], %129 {strides = array<i32>} : memref<8x128xf32, #tpu.memory_space<vmem>>, vector<4x128xf32>,
    %131 = vector.extract_strided_slice %124 {offsets = [4, 0], sizes = [4, 128], strides = [1, 1]} : vector<8x128xf32> to vector<4x128xf32>
    %cst_155 = arith.constant 0.000000e+00 : f32
    %132 = vector.broadcast %cst_155 : f32 to vector<4x128xf32>
    %133 = arith.maximumf %131, %132 : vector<4x128xf32>
    %c4_156 = arith.constant 4 : index
    %c0_157 = arith.constant 0 : index
    %134 = vector.load %arg8[%c4_156, %c0_157] : memref<8x128xf32, #tpu.memory_space<vmem>>, vector<4x128xf32>
    tpu.vector_store %arg8[%c4_156, %c0_157], %133 {strides = array<i32>} : memref<8x128xf32, #tpu.memory_space<vmem>>, vector<4x128xf32>,
    return
  }
}

</mosaic_0001>

<bundles_post_ra>
// kernel: residual_block_forward.1
= control target key start
LH: loop header
LB: loop body
LE: loop exit
PB: predicated region body
PF: predicated region fallthrough
CT: control target
= control target key end

     0   :  { %s2335_s9 = smov 4   ;;  %s2336_s19 = smov 8   ;;  %vm45_vm0 = vcmask 31744   ;;  %vm143_vm1 = vcmask 64544   ;;  %vm240_vm2 = vcmask 97344   ;;  %vm338_vm3 = vcmask 130144   ;;  %s3940_s0 = inlined_call_operand.vmem [shape: f32[4,2,9,9,4], index: 0, kind: input, shape index: {}]   ;;  %s3941_s1 = inlined_call_operand.vmem [shape: f32[36,8], index: 1, kind: input, shape index: {}]   ;;  %s3942_s3 = inlined_call_operand.vmem [shape: f32[1,8], index: 3, kind: input, shape index: {}]   ;;  %s3943_s4 = inlined_call_operand.vmem [shape: f32[1,8], index: 4, kind: input, shape index: {}]   ;;  %s3944_s2 = inlined_call_operand.vmem [shape: f32[8,72], index: 2, kind: input, shape index: {}]   ;;  %s3945_s5 = inlined_call_operand.vmem [shape: f32[8,1], index: 5, kind: input, shape index: {}]   ;;  %s3946_s6 = inlined_call_operand.vmem [shape: f32[8,1], index: 6, kind: input, shape index: {}]   ;;  %s3947_s7 = inlined_call_operand.vmem [shape: f32[4,128], index: 7, kind: input, shape index: {}]   ;;  %s3948_s8 = inlined_call_operand.vmem [shape: f32[8,128], index: 8, kind: output, shape index: {}]  }
   0x1   :  { %v2397_v0 = vld [vmem:[%s3940_s0 + $0x140] sm:$0xff]  ;;  %v2415_v3 = vld [vmem:[%s3940_s0 + $0x150] sm:$0xff]  ;;  %s2337_s13 = smov 12   ;;  %s2338_s16 = smov 16   ;;  %vm913_vm4 = vcmask 1043456   ;;  %vm436_vm5 = vcmask 162944  }
   0x2   :  { %v2160_v1 = vld [vmem:[%s3940_s0 + $0x120] sm:$0xff]  ;;  %99 = vrot.lane.b32.xlu1 %v2397_v0, %s2335_s9  ;;  %v2420_v4 = vld [vmem:[%s3940_s0 + $0x130] sm:$0xff]  ;;  %s2339_s18 = smov 20   ;;  %s2340_s20 = smov 28   ;;  %vm533_vm6 = vcmask 195744   ;;  %vm631_vm7 = vcmask 228544  }
   0x3   :  { %95 = vrot.lane.b32.xlu0 %v2160_v1, %s2335_s9  ;;  %v2408_v2 = vld [vmem:[%s3940_s0 + $0x160] sm:$0xff]  ;;  %v2429_v5 = vld [vmem:[%s3940_s0 + $0x170] sm:$0xff]  ;;  %s2341_s21 = smov 24   ;;  %s2342_s22 = smov 32   ;;  %vm729_vm8 = vcmask 261344   ;;  %vm826_vm9 = vcmask 294144  }
   0x4   :  { %103 = vrot.lane.b32.xlu2 %v2408_v2, %s2335_s9  ;;  %v2436_v6 = vld [vmem:[%s3940_s0 + $0x190] sm:$0xff]  ;;  %v2441_v7 = vld [vmem:[%s3940_s0 + $0x180] sm:$0xff]  ;;  %vm864_vm10 = vcmask 293888   ;;  %vm982_vm11 = vcmask 64512   ;;  %vm1148_vm12 = vcmask 58368   ;;  %vm1157_vm13 = vcmask 57344  }
   0x5   :  { %v2168_v8 = vld [vmem:[%s3940_s0 + $0x1b0] sm:$0xff]  ;;  %v2459_v10 = vld [vmem:[%s3940_s0 + $0x1c0] sm:$0xff]  ;;  %s2347_s17 = smov 56  }
   0x6   :  { %v2454_v9 = vld [vmem:[%s3940_s0 + $0x1d0] sm:$0xff]  ;;  %v2468_v11 = vld [vmem:[%s3940_s0 + $0x1e0] sm:$0xff] }
   0x7   :  { %v2475_v12 = vld [vmem:[%s3940_s0 + $0x200] sm:$0xff]  ;;  %v2480_v13 = vld [vmem:[%s3940_s0 + $0x1f0] sm:$0xff] }
   0x8   :  { %v2489_v14 = vld [vmem:[%s3940_s0 + $0x210] sm:$0xff]  ;;  %v160_v15 = vld [vmem:[%s3940_s0 + $0x1] sm:$0xff] }
   0x9   :  { %v2499_v16 = vld [vmem:[%s3940_s0 + $0x220] sm:$0xff]  ;;  %v2507_v17 = vld [vmem:[%s3940_s0 + $0x11] sm:$0xff] }
   0xa   :  { %101 = vrot.lane.b32.xlu1 %v2415_v3, %s2335_s9  ;;  %v2514_v18 = vld [vmem:[%s3940_s0 + $0x31] sm:$0xff]  ;;  %v2519_v19 = vld [vmem:[%s3940_s0 + $0x21] sm:$0xff] }
   0xb   :  { %97 = vrot.lane.b32.xlu0 %v2420_v4, %s2335_s9  ;;  %v2528_v20 = vld [vmem:[%s3940_s0 + $0x41] sm:$0xff]  ;;  %v2540_v22 = vld [vmem:[%s3940_s0 + $0x51] sm:$0xff] }
   0xc   :  { %105 = vrot.lane.b32.xlu2 %v2429_v5, %s2335_s9  ;;  %v2535_v21 = vld [vmem:[%s3940_s0 + $0x61] sm:$0xff]  ;;  %v2549_v23 = vld [vmem:[%s3940_s0 + $0x71] sm:$0xff] }
   0xd   :  { %v2556_v24 = vld [vmem:[%s3940_s0 + $0xa1] sm:$0xff]  ;;  %v168_v25 = vld [vmem:[%s3940_s0 + $0x91] sm:$0xff] }
   0xe   :  { %v2567_v26 = vld [vmem:[%s3940_s0 + $0xb1] sm:$0xff]  ;;  %v2579_v28 = vld [vmem:[%s3940_s0 + $0xc1] sm:$0xff] }
   0xf   :  { %v2574_v27 = vld [vmem:[%s3940_s0 + $0xd1] sm:$0xff]  ;;  %v2588_v29 = vld [vmem:[%s3940_s0 + $0xe1] sm:$0xff] }
  0x10   :  { %v2595_v30 = vld [vmem:[%s3940_s0 + $0x101] sm:$0xff]  ;;  %v2600_v31 = vld [vmem:[%s3940_s0 + $0xf1] sm:$0xff] }
  0x11   :  { %v2176_v32 = vld [vmem:[%s3940_s0 + $0x240] sm:$0xff]  ;;  %v2177_v37 = vld [vmem:[%s3940_s0 + $0x250] sm:$0xff] }
  0x12   :  { %109 = vrot.lane.b32.xlu1 %v2436_v6, %s2335_s9  ;;  %v29_v33 = vld [vmem:[%s3940_s0] sm:$0xff]  ;;  %v2179_v38 = vld [vmem:[%s3940_s0 + $0x270] sm:$0xff] }
  0x13   :  { %107 = vrot.lane.b32.xlu0 %v2441_v7, %s2335_s9  ;;  %v2615_v34 = vld [vmem:[%s3940_s0 + $0x20] sm:$0xff]  ;;  %46 = vst.msk [vmem:[#allocation2] sm:$0xff] %vm45_vm0, %v29_v33  ;;  %v2642_v39 = vld [vmem:[%s3940_s0 + $0x30] sm:$0xff] }
  0x14   :  { %111 = vrot.lane.b32.xlu2 %v2168_v8, %s2335_s9  ;;  %48 = vst.msk [vmem:[#allocation2 + $0x10] sm:$0xff] %vm45_vm0, %v2615_v34  ;;  %v2624_v35 = vld [vmem:[%s3940_s0 + $0x40] sm:$0xff]  ;;  %v2647_v40 = vld [vmem:[%s3940_s0 + $0x10] sm:$0xff] }
  0x15   :  { %v2178_v36 = vld [vmem:[%s3940_s0 + $0x260] sm:$0xff]  ;;  %50 = vst.msk [vmem:[#allocation2 + $0x20] sm:$0xff] %vm45_vm0, %v2624_v35  ;;  %v2657_v41 = vld [vmem:[%s3940_s0 + $0x50] sm:$0xff] }
  0x16   :  { %49 = vst.msk [vmem:[#allocation2 + $0x18] sm:$0xff] %vm45_vm0, %v2642_v39  ;;  %v2181_v42 = vld [vmem:[%s3940_s0 + $0x290] sm:$0xff]  ;;  %v2180_v43 = vld [vmem:[%s3940_s0 + $0x280] sm:$0xff] }
  0x17   :  { %47 = vst.msk [vmem:[#allocation2 + $0x8] sm:$0xff] %vm45_vm0, %v2647_v40  ;;  %v2182_v45 = vld [vmem:[%s3940_s0 + $0x2a0] sm:$0xff]  ;;  %v2676_v46 = vld [vmem:[%s3940_s0 + $0x70] sm:$0xff] }
  0x18   :  { %51 = vst.msk [vmem:[#allocation2 + $0x28] sm:$0xff] %vm45_vm0, %v2657_v41  ;;  %v2681_v47 = vld [vmem:[%s3940_s0 + $0x60] sm:$0xff]  ;;  %v37_v48 = vld [vmem:[%s3940_s0 + $0x90] sm:$0xff] }
  0x19   :  { %53 = vst.msk [vmem:[#allocation2 + $0x38] sm:$0xff] %vm45_vm0, %v2676_v46  ;;  %v2184_v49 = vld [vmem:[%s3940_s0 + $0x2d0] sm:$0xff]  ;;  %v2185_v52 = vld [vmem:[%s3940_s0 + $0x2e0] sm:$0xff] }
  0x1a   :  { %115 = vrot.lane.b32.xlu1 %v2454_v9, %s2335_s9  ;;  %52 = vst.msk [vmem:[#allocation2 + $0x30] sm:$0xff] %vm45_vm0, %v2681_v47  ;;  %v2183_v50 = vld [vmem:[%s3940_s0 + $0x2b0] sm:$0xff]  ;;  %v2712_v54 = vld [vmem:[%s3940_s0 + $0xa0] sm:$0xff] }
  0x1b   :  { %113 = vrot.lane.b32.xlu0 %v2459_v10, %s2335_s9  ;;  %54 = vst.msk [vmem:[#allocation2 + $0x40] sm:$0xff] %vm45_vm0, %v37_v48  ;;  %v2707_v53 = vld [vmem:[%s3940_s0 + $0xb0] sm:$0xff]  ;;  %v2722_v55 = vld [vmem:[%s3940_s0 + $0xc0] sm:$0xff] }
  0x1c   :  { %117 = vrot.lane.b32.xlu2 %v2468_v11, %s2335_s9  ;;  %56 = vst.msk [vmem:[#allocation2 + $0x50] sm:$0xff] %vm45_vm0, %v2707_v53  ;;  %v2187_v56 = vld [vmem:[%s3940_s0 + $0x300] sm:$0xff]  ;;  %v2186_v57 = vld [vmem:[%s3940_s0 + $0x2f0] sm:$0xff] }
  0x1d   :  { %55 = vst.msk [vmem:[#allocation2 + $0x48] sm:$0xff] %vm45_vm0, %v2712_v54  ;;  %v2188_v59 = vld [vmem:[%s3940_s0 + $0x310] sm:$0xff]  ;;  %v2741_v62 = vld [vmem:[%s3940_s0 + $0xe0] sm:$0xff] }
  0x1e   :  { %57 = vst.msk [vmem:[#allocation2 + $0x58] sm:$0xff] %vm45_vm0, %v2722_v55  ;;  %v2749_v63 = vld [vmem:[%s3940_s0 + $0xd0] sm:$0xff]  ;;  %v2189_v8 = vld [vmem:[%s3940_s0 + $0x320] sm:$0xff] }
  0x1f   :  { %v2190_v1 = vld [vmem:[%s3940_s0 + $0x330] sm:$0xff]  ;;  %59 = vst.msk [vmem:[#allocation2 + $0x68] sm:$0xff] %vm45_vm0, %v2741_v62 }
  0x20   :  { %58 = vst.msk [vmem:[#allocation2 + $0x60] sm:$0xff] %vm45_vm0, %v2749_v63 }
  0x22   :  { %121 = vrot.lane.b32.xlu1 %v2475_v12, %s2335_s9 }
  0x23   :  { %119 = vrot.lane.b32.xlu0 %v2480_v13, %s2335_s9 }
  0x24   :  { %123 = vrot.lane.b32.xlu2 %v2489_v14, %s2335_s9 }
  0x2a   :  { %192 = vrot.lane.b32.xlu1 %v160_v15, %s2336_s19 }
  0x2b   :  { %125 = vrot.lane.b32.xlu0 %v2499_v16, %s2335_s9 }
  0x2c   :  { %194 = vrot.lane.b32.xlu2 %v2507_v17, %s2336_s19 }
  0x32   :  { %198 = vrot.lane.b32.xlu1 %v2514_v18, %s2336_s19 }
  0x33   :  { %196 = vrot.lane.b32.xlu0 %v2519_v19, %s2336_s19 }
  0x34   :  { %200 = vrot.lane.b32.xlu2 %v2528_v20, %s2336_s19 }
  0x3a   :  { %204 = vrot.lane.b32.xlu1 %v2535_v21, %s2336_s19 }
  0x3b   :  { %202 = vrot.lane.b32.xlu0 %v2540_v22, %s2336_s19 }
  0x3c   :  { %206 = vrot.lane.b32.xlu2 %v2549_v23, %s2336_s19 }
  0x42   :  { %210 = vrot.lane.b32.xlu1 %v2556_v24, %s2336_s19 }
  0x43   :  { %208 = vrot.lane.b32.xlu0 %v168_v25, %s2336_s19  ;;  %v2762_v25 = vld [vmem:[%s3940_s0 + $0xf0] sm:$0xff] }
  0x44   :  { %212 = vrot.lane.b32.xlu2 %v2567_v26, %s2336_s19  ;;  %60 = vst.msk [vmem:[#allocation2 + $0x70] sm:$0xff] %vm45_vm0, %v2762_v25 }
  0x4a   :  { %216 = vrot.lane.b32.xlu1 %v2574_v27, %s2336_s19 }
  0x4b   :  { %214 = vrot.lane.b32.xlu0 %v2579_v28, %s2336_s19 }
  0x4c   :  { %218 = vrot.lane.b32.xlu2 %v2588_v29, %s2336_s19 }
  0x52   :  { %222 = vrot.lane.b32.xlu1 %v2595_v30, %s2336_s19 }
  0x53   :  { %220 = vrot.lane.b32.xlu0 %v2600_v31, %s2336_s19 }
  0x54   :  { %290 = vrot.lane.b32.xlu2 %v2176_v32, %s2337_s13  ;;  %v2191_v32 = vld [vmem:[%s3940_s0 + $0x340] sm:$0xff] }
  0x5a   :  { %294 = vrot.lane.b32.xlu1 %v2178_v36, %s2337_s13 }
  0x5b   :  { %292 = vrot.lane.b32.xlu0 %v2177_v37, %s2337_s13  ;;  %v2777_v37 = vld [vmem:[%s3940_s0 + $0x100] sm:$0xff] }
  0x5c   :  { %296 = vrot.lane.b32.xlu2 %v2179_v38, %s2337_s13  ;;  %v2193_v38 = vld [vmem:[%s3940_s0 + $0x370] sm:$0xff]  ;;  %61 = vst.msk [vmem:[#allocation2 + $0x78] sm:$0xff] %vm45_vm0, %v2777_v37 }
  0x5e   :  { %v104_v44 = vpop.permute.xlu2 %103 }
  0x5f   :  { %148 = vst.msk [vmem:[#allocation2 + $0x20] sm:$0xff] %vm143_vm1, %v104_v44  ;;  %v2208_v44 = vld [vmem:[%s3940_s0 + $0x241] sm:$0xff] }
  0x62   :  { %300 = vrot.lane.b32.xlu1 %v2181_v42, %s2337_s13  ;;  %v2192_v42 = vld [vmem:[%s3940_s0 + $0x360] sm:$0xff] }
  0x63   :  { %298 = vrot.lane.b32.xlu0 %v2180_v43, %s2337_s13 }
  0x64   :  { %302 = vrot.lane.b32.xlu2 %v2182_v45, %s2337_s13 }
  0x66   :  { %v106_v51 = vpop.permute.xlu2 %105 }
  0x67   :  { %149 = vst.msk [vmem:[#allocation2 + $0x28] sm:$0xff] %vm143_vm1, %v106_v51 }
  0x6a   :  { %306 = vrot.lane.b32.xlu1 %v2184_v49, %s2337_s13 }
  0x6b   :  { %304 = vrot.lane.b32.xlu0 %v2183_v50, %s2337_s13 }
  0x6c   :  { %308 = vrot.lane.b32.xlu2 %v2185_v52, %s2337_s13  ;;  %v2214_v52 = vld [vmem:[%s3940_s0 + $0x2a1] sm:$0xff] }
  0x6e   :  { %v112_v58 = vpop.permute.xlu2 %111 }
  0x6f   :  { %152 = vst.msk [vmem:[#allocation2 + $0x40] sm:$0xff] %vm143_vm1, %v112_v58 }
  0x72   :  { %312 = vrot.lane.b32.xlu1 %v2187_v56, %s2337_s13 }
  0x73   :  { %310 = vrot.lane.b32.xlu0 %v2186_v57, %s2337_s13 }
  0x74   :  { %v100_v60 = vpop.permute.xlu1 %99  ;;  %314 = vrot.lane.b32.xlu2 %v2188_v59, %s2337_s13 }
  0x75   :  { %v96_v61 = vpop.permute.xlu0 %95  ;;  %146 = vst.msk [vmem:[#allocation2 + $0x10] sm:$0xff] %vm143_vm1, %v100_v60 }
  0x76   :  { %144 = vst.msk [vmem:[#allocation2] sm:$0xff] %vm143_vm1, %v96_v61  ;;  %v118_v15 = vpop.permute.xlu2 %117 }
  0x77   :  { %155 = vst.msk [vmem:[#allocation2 + $0x58] sm:$0xff] %vm143_vm1, %v118_v15  ;;  %v2210_v15 = vld [vmem:[%s3940_s0 + $0x261] sm:$0xff] }
  0x7a   :  { %318 = vrot.lane.b32.xlu1 %v2190_v1, %s2337_s13 }
  0x7b   :  { %316 = vrot.lane.b32.xlu0 %v2189_v8, %s2337_s13 }
  0x7c   :  { %v102_v33 = vpop.permute.xlu1 %101  ;;  %320 = vrot.lane.b32.xlu2 %v2191_v32, %s2337_s13  ;;  %v2231_v32 = vld [vmem:[%s3940_s0 + $0x80] sm:$0xff] }
  0x7d   :  { %v98_v36 = vpop.permute.xlu0 %97  ;;  %147 = vst.msk [vmem:[#allocation2 + $0x18] sm:$0xff] %vm143_vm1, %v102_v33 }
  0x7e   :  { %145 = vst.msk [vmem:[#allocation2 + $0x8] sm:$0xff] %vm143_vm1, %v98_v36  ;;  %v124_v43 = vpop.permute.xlu2 %123  ;;  %v2247_v36 = vld [vmem:[%s3940_s0 + $0x1a0] sm:$0xff] }
  0x7f   :  { %158 = vst.msk [vmem:[#allocation2 + $0x70] sm:$0xff] %vm143_vm1, %v124_v43  ;;  %v2263_v43 = vld [vmem:[%s3940_s0 + $0x81] sm:$0xff] }
  0x82   :  { %390 = vrot.lane.b32.xlu1 %v2193_v38, %s2338_s16 }
  0x83   :  { %388 = vrot.lane.b32.xlu0 %v2192_v42, %s2338_s16 }
  0x84   :  { %v110_v45 = vpop.permute.xlu1 %109  ;;  %485 = vrot.lane.b32.xlu2 %v2208_v44, %s2339_s18 }
  0x85   :  { %v108_v48 = vpop.permute.xlu0 %107  ;;  %151 = vst.msk [vmem:[#allocation2 + $0x38] sm:$0xff] %vm143_vm1, %v110_v45 }
  0x86   :  { %150 = vst.msk [vmem:[#allocation2 + $0x30] sm:$0xff] %vm143_vm1, %v108_v48  ;;  %v195_v49 = vpop.permute.xlu2 %194 }
  0x87   :  { %242 = vst.msk [vmem:[#allocation2 + $0x8] sm:$0xff] %vm240_vm2, %v195_v49  ;;  %v2200_v49 = vld [vmem:[%s3940_s0 + $0x3f0] sm:$0xff] }
  0x8a   :  { %681 = vrot.lane.b32.xlu1 %v2420_v4, %s2340_s20  ;;  %v2198_v4 = vld [vmem:[%s3940_s0 + $0x3c0] sm:$0xff] }
  0x8b   :  { %583 = vrot.lane.b32.xlu0 %v2647_v40, %s2341_s21 }
  0x8c   :  { %v116_v50 = vpop.permute.xlu1 %115  ;;  %778 = vrot.lane.b32.xlu2 %v2507_v17, %s2342_s22  ;;  %v2209_v17 = vld [vmem:[%s3940_s0 + $0x251] sm:$0xff] }
  0x8d   :  { %v114_v51 = vpop.permute.xlu0 %113  ;;  %154 = vst.msk [vmem:[#allocation2 + $0x50] sm:$0xff] %vm143_vm1, %v116_v50 }
  0x8e   :  { %153 = vst.msk [vmem:[#allocation2 + $0x48] sm:$0xff] %vm143_vm1, %v114_v51  ;;  %v201_v56 = vpop.permute.xlu2 %200 }
  0x8f   :  { %245 = vst.msk [vmem:[#allocation2 + $0x20] sm:$0xff] %vm240_vm2, %v201_v56 }
  0x92   :  { %497 = vrot.lane.b32.xlu1 %v2214_v52, %s2339_s18  ;;  %v2195_v52 = vld [vmem:[%s3940_s0 + $0x390] sm:$0xff] }
  0x93   :  { %400 = vrot.lane.b32.xlu0 %v2198_v4, %s2338_s16 }
  0x94   :  { %v122_v40 = vpop.permute.xlu1 %121  ;;  %595 = vrot.lane.b32.xlu2 %v2676_v46, %s2341_s21 }
  0x95   :  { %v120_v57 = vpop.permute.xlu0 %119  ;;  %157 = vst.msk [vmem:[#allocation2 + $0x68] sm:$0xff] %vm143_vm1, %v122_v40 }
  0x96   :  { %156 = vst.msk [vmem:[#allocation2 + $0x60] sm:$0xff] %vm143_vm1, %v120_v57  ;;  %v207_v58 = vpop.permute.xlu2 %206 }
  0x97   :  { %248 = vst.msk [vmem:[#allocation2 + $0x38] sm:$0xff] %vm240_vm2, %v207_v58 }
  0x9a   :  { %693 = vrot.lane.b32.xlu1 %v2436_v6, %s2340_s20 }
  0x9b   :  { %487 = vrot.lane.b32.xlu0 %v2209_v17, %s2339_s18 }
  0x9c   :  { %v193_v59 = vpop.permute.xlu1 %192  ;;  %585 = vrot.lane.b32.xlu2 %v2615_v34, %s2341_s21  ;;  %v2215_v34 = vld [vmem:[%s3940_s0 + $0x2b1] sm:$0xff] }
  0x9d   :  { %v126_v60 = vpop.permute.xlu0 %125  ;;  %241 = vst.msk [vmem:[#allocation2] sm:$0xff] %vm240_vm2, %v193_v59 }
  0x9e   :  { %159 = vst.msk [vmem:[#allocation2 + $0x78] sm:$0xff] %vm143_vm1, %v126_v60  ;;  %v213_v46 = vpop.permute.xlu2 %212  ;;  %v2220_v60 = vld [vmem:[%s3940_s0 + $0x311] sm:$0xff]  ;;  %vm1327_vm1 = vcmask 130112  }
  0x9f   :  { %251 = vst.msk [vmem:[#allocation2 + $0x50] sm:$0xff] %vm240_vm2, %v213_v46  ;;  %v863_v46 = vld [vmem:[%s3941_s1 + $0x20] sm:$0xf] }
  0xa0   :  { %2272 = vmatpush.msk.msra.mxu0 %vm913_vm4, %v863_v46  ;;  %2306 = vmatpush.msk.msra.mxu2 %vm913_vm4, %v863_v46 }
  0xa1   :  { %2307 = vmatpush.msk.msra.mxu3 %vm913_vm4, %v863_v46  ;;  %vm1618_vm4 = vcmask 326912  }
  0xa2   :  { %683 = vrot.lane.b32.xlu1 %v2397_v0, %s2340_s20  ;;  %v2199_v0 = vld [vmem:[%s3940_s0 + $0x3d0] sm:$0xff] }
  0xa3   :  { %790 = vrot.lane.b32.xlu0 %v2549_v23, %s2342_s22 }
  0xa4   :  { %v199_v6 = vpop.permute.xlu1 %198  ;;  %780 = vrot.lane.b32.xlu2 %v2519_v19, %s2342_s22  ;;  %v2194_v19 = vld [vmem:[%s3940_s0 + $0x380] sm:$0xff] }
  0xa5   :  { %v197_v61 = vpop.permute.xlu0 %196  ;;  %244 = vst.msk [vmem:[#allocation2 + $0x18] sm:$0xff] %vm240_vm2, %v199_v6 }
  0xa6   :  { %243 = vst.msk [vmem:[#allocation2 + $0x10] sm:$0xff] %vm240_vm2, %v197_v61  ;;  %v219_v1 = vpop.permute.xlu2 %218 }
  0xa7   :  { %254 = vst.msk [vmem:[#allocation2 + $0x68] sm:$0xff] %vm240_vm2, %v219_v1 }
  0xaa   :  { %499 = vrot.lane.b32.xlu1 %v2215_v34, %s2339_s18  ;;  %v862_v34 = vld [vmem:[%s3941_s1 + $0x18] sm:$0xff] }
  0xab   :  { %402 = vrot.lane.b32.xlu0 %v2199_v0, %s2338_s16  ;;  %929 = vmatpush.msra.mxu0 %v862_v34  ;;  %v2196_v0 = vld [vmem:[%s3940_s0 + $0x3a0] sm:$0xff] }
  0xac   :  { %v205_v23 = vpop.permute.xlu1 %204  ;;  %392 = vrot.lane.b32.xlu2 %v2194_v19, %s2338_s16  ;;  %2308 = vmatpush.msra.mxu2 %v862_v34  ;;  %v861_v19 = vld [vmem:[%s3941_s1 + $0x10] sm:$0xff] }
  0xad   :  { %v203_v8 = vpop.permute.xlu0 %202  ;;  %247 = vst.msk [vmem:[#allocation2 + $0x30] sm:$0xff] %vm240_vm2, %v205_v23  ;;  %2309 = vmatpush.msra.mxu3 %v862_v34  ;;  %930 = vmatpush.msra.mxu0 %v861_v19  ;;  %v860_v23 = vld [vmem:[%s3941_s1 + $0x8] sm:$0xff]  ;;  %v2255_v34 = vld [vmem:[%s3940_s0 + $0x230] sm:$0xff] }
  0xae   :  { %246 = vst.msk [vmem:[#allocation2 + $0x28] sm:$0xff] %vm240_vm2, %v203_v8  ;;  %v291_v33 = vpop.permute.xlu2 %290  ;;  %2310 = vmatpush.msra.mxu2 %v861_v19  ;;  %v859_v8 = vld [vmem:[%s3941_s1] sm:$0xff] }
  0xaf   :  { %339 = vst.msk [vmem:[#allocation2] sm:$0xff] %vm338_vm3, %v291_v33  ;;  %2311 = vmatpush.msra.mxu3 %v861_v19  ;;  %931 = vmatpush.msra.mxu0 %v860_v23 }
  0xb0   :  { %2312 = vmatpush.msra.mxu2 %v860_v23 }
  0xb1   :  { %2313 = vmatpush.msra.mxu3 %v860_v23  ;;  %932 = vmatpush.msra.mxu0 %v859_v8 }
  0xb2   :  { %489 = vrot.lane.b32.xlu1 %v2210_v15, %s2339_s18  ;;  %2314 = vmatpush.msra.mxu2 %v859_v8 }
  0xb3   :  { %597 = vrot.lane.b32.xlu0 %v2231_v32, %s2341_s21  ;;  %2315 = vmatpush.msra.mxu3 %v859_v8 }
  0xb4   :  { %v211_v38 = vpop.permute.xlu1 %210  ;;  %695 = vrot.lane.b32.xlu2 %v2247_v36, %s2340_s20 }
  0xb5   :  { %v209_v42 = vpop.permute.xlu0 %208  ;;  %250 = vst.msk [vmem:[#allocation2 + $0x48] sm:$0xff] %vm240_vm2, %v211_v38 }
  0xb6   :  { %249 = vst.msk [vmem:[#allocation2 + $0x40] sm:$0xff] %vm240_vm2, %v209_v42  ;;  %v297_v44 = vpop.permute.xlu2 %296 }
  0xb7   :  { %342 = vst.msk [vmem:[#allocation2 + $0x18] sm:$0xff] %vm338_vm3, %v297_v44 }
  0xba   :  { %792 = vrot.lane.b32.xlu1 %v2263_v43, %s2342_s22 }
  0xbb   :  { %587 = vrot.lane.b32.xlu0 %v2642_v39, %s2341_s21  ;;  %v2216_v39 = vld [vmem:[%s3940_s0 + $0x2d1] sm:$0xff] }
  0xbc   :  { %v217_v45 = vpop.permute.xlu1 %216  ;;  %685 = vrot.lane.b32.xlu2 %v2415_v3, %s2340_s20 }
  0xbd   :  { %v215_v48 = vpop.permute.xlu0 %214  ;;  %253 = vst.msk [vmem:[#allocation2 + $0x60] sm:$0xff] %vm240_vm2, %v217_v45  ;;  %v2221_v45 = vld [vmem:[%s3940_s0 + $0x321] sm:$0xff] }
  0xbe   :  { %252 = vst.msk [vmem:[#allocation2 + $0x58] sm:$0xff] %vm240_vm2, %v215_v48  ;;  %v303_v50 = vpop.permute.xlu2 %302 }
  0xbf   :  { %345 = vst.msk [vmem:[#allocation2 + $0x30] sm:$0xff] %vm338_vm3, %v303_v50  ;;  %v2197_v50 = vld [vmem:[%s3940_s0 + $0x3b0] sm:$0xff] }
  0xc2   :  { %404 = vrot.lane.b32.xlu1 %v2200_v49, %s2338_s16 }
  0xc3   :  { %782 = vrot.lane.b32.xlu0 %v2514_v18, %s2342_s22  ;;  %v2211_v18 = vld [vmem:[%s3940_s0 + $0x271] sm:$0xff] }
  0xc4   :  { %v223_v51 = vpop.permute.xlu1 %222  ;;  %501 = vrot.lane.b32.xlu2 %v2216_v39, %s2339_s18 }
  0xc5   :  { %v221_v3 = vpop.permute.xlu0 %220  ;;  %256 = vst.msk [vmem:[#allocation2 + $0x78] sm:$0xff] %vm240_vm2, %v223_v51 }
  0xc6   :  { %255 = vst.msk [vmem:[#allocation2 + $0x70] sm:$0xff] %vm240_vm2, %v221_v3  ;;  %v309_v4 = vpop.permute.xlu2 %308  ;;  %vm1424_vm2 = vcmask 195712  }
  0xc7   :  { %348 = vst.msk [vmem:[#allocation2 + $0x48] sm:$0xff] %vm338_vm3, %v309_v4 }
  0xca   :  { %599 = vrot.lane.b32.xlu1 %v2712_v54, %s2341_s21 }
  0xcb   :  { %394 = vrot.lane.b32.xlu0 %v2195_v52, %s2338_s16  ;;  %v2213_v52 = vld [vmem:[%s3940_s0 + $0x291] sm:$0xff] }
  0xcc   :  { %v295_v56 = vpop.permute.xlu1 %294  ;;  %491 = vrot.lane.b32.xlu2 %v2211_v18, %s2339_s18 }
  0xcd   :  { %v293_v40 = vpop.permute.xlu0 %292  ;;  %341 = vst.msk [vmem:[#allocation2 + $0x10] sm:$0xff] %vm338_vm3, %v295_v56 }
  0xce   :  { %340 = vst.msk [vmem:[#allocation2 + $0x8] sm:$0xff] %vm338_vm3, %v293_v40  ;;  %v315_v57 = vpop.permute.xlu2 %314 }
  0xcf   :  { %351 = vst.msk [vmem:[#allocation2 + $0x60] sm:$0xff] %vm338_vm3, %v315_v57 }
  0xd2   :  { %589 = vrot.lane.b32.xlu1 %v2624_v35, %s2341_s21 }
  0xd3   :  { %697 = vrot.lane.b32.xlu0 %v2459_v10, %s2340_s20  ;;  %v2201_v10 = vld [vmem:[%s3940_s0 + $0x400] sm:$0xff] }
  0xd4   :  { %v301_v54 = vpop.permute.xlu1 %300  ;;  %794 = vrot.lane.b32.xlu2 %v2556_v24, %s2342_s22  ;;  %v2217_v24 = vld [vmem:[%s3940_s0 + $0x2e1] sm:$0xff] }
  0xd5   :  { %v299_v17 = vpop.permute.xlu0 %298  ;;  %344 = vst.msk [vmem:[#allocation2 + $0x28] sm:$0xff] %vm338_vm3, %v301_v54 }
  0xd6   :  { %343 = vst.msk [vmem:[#allocation2 + $0x20] sm:$0xff] %vm338_vm3, %v299_v17  ;;  %v321_v58 = vpop.permute.xlu2 %320  ;;  %v2222_v17 = vld [vmem:[%s3940_s0 + $0x331] sm:$0xff] }
  0xd7   :  { %354 = vst.msk [vmem:[#allocation2 + $0x78] sm:$0xff] %vm338_vm3, %v321_v58 }
  0xda   :  { %784 = vrot.lane.b32.xlu1 %v2528_v20, %s2342_s22 }
  0xdb   :  { %687 = vrot.lane.b32.xlu0 %v2408_v2, %s2340_s20  ;;  %v2204_v2 = vld [vmem:[%s3940_s0 + $0x430] sm:$0xff] }
  0xdc   :  { %v307_v35 = vpop.permute.xlu1 %306  ;;  %406 = vrot.lane.b32.xlu2 %v2201_v10, %s2338_s16 }
  0xdd   :  { %v305_v59 = vpop.permute.xlu0 %304  ;;  %347 = vst.msk [vmem:[#allocation2 + $0x40] sm:$0xff] %vm338_vm3, %v307_v35 }
  0xde   :  { %346 = vst.msk [vmem:[#allocation2 + $0x38] sm:$0xff] %vm338_vm3, %v305_v59  ;;  %v486_v20 = vpop.permute.xlu2 %485 }
  0xe2   :  { %503 = vrot.lane.b32.xlu1 %v2217_v24, %s2339_s18 }
  0xe3   :  { %412 = vrot.lane.b32.xlu0 %v2204_v2, %s2338_s16 }
  0xe4   :  { %v313_v6 = vpop.permute.xlu1 %312  ;;  %509 = vrot.lane.b32.xlu2 %v2220_v60, %s2339_s18 }
  0xe5   :  { %v311_v61 = vpop.permute.xlu0 %310  ;;  %350 = vst.msk [vmem:[#allocation2 + $0x58] sm:$0xff] %vm338_vm3, %v313_v6 }
  0xe6   :  { %349 = vst.msk [vmem:[#allocation2 + $0x50] sm:$0xff] %vm338_vm3, %v311_v61  ;;  %v779_v1 = vpop.permute.xlu2 %778 }
  0xea   :  { %601 = vrot.lane.b32.xlu1 %v2707_v53, %s2341_s21  ;;  %v2212_v53 = vld [vmem:[%s3940_s0 + $0x281] sm:$0xff] }
  0xeb   :  { %396 = vrot.lane.b32.xlu0 %v2196_v0, %s2338_s16  ;;  %v2271_v0 = vld [vmem:[%s3940_s0 + $0x111] sm:$0xff] }
  0xec   :  { %v319_v15 = vpop.permute.xlu1 %318  ;;  %607 = vrot.lane.b32.xlu2 %v2741_v62, %s2341_s21 }
  0xed   :  { %v317_v32 = vpop.permute.xlu0 %316  ;;  %353 = vst.msk [vmem:[#allocation2 + $0x70] sm:$0xff] %vm338_vm3, %v319_v15 }
  0xee   :  { %352 = vst.msk [vmem:[#allocation2 + $0x68] sm:$0xff] %vm338_vm3, %v317_v32  ;;  %v596_v33 = vpop.permute.xlu2 %595  ;;  %vm1521_vm3 = vcmask 261312  }
  0xf2   :  { %699 = vrot.lane.b32.xlu1 %v2454_v9, %s2340_s20 }
  0xf3   :  { %493 = vrot.lane.b32.xlu0 %v2212_v53, %s2339_s18 }
  0xf4   :  { %v391_v36 = vpop.permute.xlu1 %390  ;;  %705 = vrot.lane.b32.xlu2 %v2475_v12, %s2340_s20 }
  0xf5   :  { %v389_v38 = vpop.permute.xlu0 %388  ;;  %438 = vst.msk [vmem:[#allocation2 + $0x8] sm:$0xff] %vm436_vm5, %v391_v36 }
  0xf6   :  { %437 = vst.msk [vmem:[#allocation2] sm:$0xff] %vm436_vm5, %v389_v38  ;;  %v586_v62 = vpop.permute.xlu2 %585 }
  0xf7   :  { %534 = vst.msk [vmem:[#allocation2] sm:$0xff] %vm533_vm6, %v486_v20 }
  0xfa   :  { %796 = vrot.lane.b32.xlu1 %v2567_v26, %s2342_s22  ;;  %v2202_v26 = vld [vmem:[%s3940_s0 + $0x410] sm:$0xff] }
  0xfb   :  { %591 = vrot.lane.b32.xlu0 %v2657_v41, %s2341_s21 }
  0xfc   :  { %v682_v9 = vpop.permute.xlu1 %681  ;;  %802 = vrot.lane.b32.xlu2 %v2588_v29, %s2342_s22 }
  0xfd   :  { %v584_v42 = vpop.permute.xlu0 %583 }
  0xfe   :  { %632 = vst.msk [vmem:[#allocation2] sm:$0xff] %vm631_vm7, %v584_v42  ;;  %v781_v12 = vpop.permute.xlu2 %780 }
  0xff   :  { %730 = vst.msk [vmem:[#allocation2] sm:$0xff] %vm729_vm8, %v682_v9 }
 0x100   :  { %827 = vst.msk [vmem:[#allocation2] sm:$0xff] %vm826_vm9, %v779_v1 }
 0x102   :  { %786 = vrot.lane.b32.xlu1 %v2540_v22, %s2342_s22  ;;  %v2205_v22 = vld [vmem:[%s3940_s0 + $0x440] sm:$0xff] }
 0x103   :  { %689 = vrot.lane.b32.xlu0 %v2429_v5, %s2340_s20  ;;  %v2218_v5 = vld [vmem:[%s3940_s0 + $0x2f1] sm:$0xff] }
 0x104   :  { %v498_v41 = vpop.permute.xlu1 %497  ;;  %408 = vrot.lane.b32.xlu2 %v2202_v26, %s2338_s16 }
 0x105   :  { %v401_v43 = vpop.permute.xlu0 %400 }
 0x106   :  { %443 = vst.msk [vmem:[#allocation2 + $0x30] sm:$0xff] %vm436_vm5, %v401_v43  ;;  %v393_v44 = vpop.permute.xlu2 %392 }
 0x107   :  { %540 = vst.msk [vmem:[#allocation2 + $0x30] sm:$0xff] %vm533_vm6, %v498_v41  ;;  %v843_v29 = vld [vmem:[#allocation2] sm:$0xff] }
 0x108   :  { %638 = vst.msk [vmem:[#allocation2 + $0x30] sm:$0xff] %vm631_vm7, %v596_v33  ;;  %2273 = vmatmul.msk.f32.vlgmr.msra.gmra.mxu0 %vm864_vm10, %v843_v29 }
 0x109   :  { %439 = vst.msk [vmem:[#allocation2 + $0x10] sm:$0xff] %vm436_vm5, %v393_v44 }
 0x10a   :  { %505 = vrot.lane.b32.xlu1 %v2218_v5, %s2339_s18 }
 0x10b   :  { %414 = vrot.lane.b32.xlu0 %v2205_v22, %s2338_s16 }
 0x10c   :  { %v694_v48 = vpop.permute.xlu1 %693  ;;  %511 = vrot.lane.b32.xlu2 %v2221_v45, %s2339_s18 }
 0x10d   :  { %v488_v49 = vpop.permute.xlu0 %487  ;;  %736 = vst.msk [vmem:[#allocation2 + $0x30] sm:$0xff] %vm729_vm8, %v694_v48 }
 0x10e   :  { %535 = vst.msk [vmem:[#allocation2 + $0x8] sm:$0xff] %vm533_vm6, %v488_v49  ;;  %v696_v39 = vpop.permute.xlu2 %695 }
 0x10f   :  { %633 = vst.msk [vmem:[#allocation2 + $0x8] sm:$0xff] %vm631_vm7, %v586_v62 }
 0x112   :  { %603 = vrot.lane.b32.xlu1 %v2722_v55, %s2341_s21 }
 0x113   :  { %398 = vrot.lane.b32.xlu0 %v2197_v50, %s2338_s16 }
 0x114   :  { %v684_v51 = vpop.permute.xlu1 %683  ;;  %609 = vrot.lane.b32.xlu2 %v2762_v25, %s2341_s21 }
 0x115   :  { %v791_v3 = vpop.permute.xlu0 %790  ;;  %731 = vst.msk [vmem:[#allocation2 + $0x8] sm:$0xff] %vm729_vm8, %v684_v51 }
 0x116   :  { %833 = vst.msk [vmem:[#allocation2 + $0x30] sm:$0xff] %vm826_vm9, %v791_v3  ;;  %v686_v4 = vpop.permute.xlu2 %685 }
 0x117   :  { %828 = vst.msk [vmem:[#allocation2 + $0x8] sm:$0xff] %vm826_vm9, %v781_v12 }
 0x11a   :  { %701 = vrot.lane.b32.xlu1 %v2468_v11, %s2340_s20 }
 0x11b   :  { %495 = vrot.lane.b32.xlu0 %v2213_v52, %s2339_s18 }
 0x11c   :  { %v500_v55 = vpop.permute.xlu1 %499  ;;  %707 = vrot.lane.b32.xlu2 %v2489_v14, %s2340_s20 }
 0x11d   :  { %v403_v18 = vpop.permute.xlu0 %402  ;;  %v849_v56 = vld [vmem:[#allocation2 + $0x30] sm:$0xff] }
 0x11e   :  { %444 = vst.msk [vmem:[#allocation2 + $0x38] sm:$0xff] %vm436_vm5, %v403_v18  ;;  %2279 = vmatmul.msk.f32.vlgmr.msra.gmra.mxu2 %vm864_vm10, %v849_v56  ;;  %v844_v25 = vld [vmem:[#allocation2 + $0x8] sm:$0xff]  ;;  %v502_v40 = vpop.permute.xlu2 %501 }
 0x11f   :  { %541 = vst.msk [vmem:[#allocation2 + $0x38] sm:$0xff] %vm533_vm6, %v500_v55  ;;  %2274 = vmatmul.msk.f32.gmra.mxu0 %vm864_vm10, %v844_v25 }
 0x122   :  { %798 = vrot.lane.b32.xlu1 %v2579_v28, %s2342_s22  ;;  %v2203_v28 = vld [vmem:[%s3940_s0 + $0x420] sm:$0xff] }
 0x123   :  { %593 = vrot.lane.b32.xlu0 %v2681_v47, %s2341_s21 }
 0x124   :  { %v490_v11 = vpop.permute.xlu1 %489  ;;  %804 = vrot.lane.b32.xlu2 %v2600_v31, %s2342_s22 }
 0x125   :  { %v598_v57 = vpop.permute.xlu0 %597  ;;  %536 = vst.msk [vmem:[#allocation2 + $0x10] sm:$0xff] %vm533_vm6, %v490_v11 }
 0x126   :  { %639 = vst.msk [vmem:[#allocation2 + $0x38] sm:$0xff] %vm631_vm7, %v598_v57  ;;  %v492_v14 = vpop.permute.xlu2 %491 }
 0x127   :  { %737 = vst.msk [vmem:[#allocation2 + $0x38] sm:$0xff] %vm729_vm8, %v696_v39 }
 0x12a   :  { %788 = vrot.lane.b32.xlu1 %v2535_v21, %s2342_s22  ;;  %v2219_v21 = vld [vmem:[%s3940_s0 + $0x301] sm:$0xff] }
 0x12b   :  { %691 = vrot.lane.b32.xlu0 %v2441_v7, %s2340_s20  ;;  %v2206_v7 = vld [vmem:[%s3940_s0 + $0x450] sm:$0xff] }
 0x12c   :  { %v793_v47 = vpop.permute.xlu1 %792  ;;  %410 = vrot.lane.b32.xlu2 %v2203_v28, %s2338_s16 }
 0x12d   :  { %v588_v54 = vpop.permute.xlu0 %587  ;;  %834 = vst.msk [vmem:[#allocation2 + $0x38] sm:$0xff] %vm826_vm9, %v793_v47 }
 0x12e   :  { %634 = vst.msk [vmem:[#allocation2 + $0x10] sm:$0xff] %vm631_vm7, %v588_v54  ;;  %v795_v31 = vpop.permute.xlu2 %794 }
 0x12f   :  { %732 = vst.msk [vmem:[#allocation2 + $0x10] sm:$0xff] %vm729_vm8, %v686_v4 }
 0x132   :  { %507 = vrot.lane.b32.xlu1 %v2219_v21, %s2339_s18 }
 0x133   :  { %416 = vrot.lane.b32.xlu0 %v2206_v7, %s2338_s16 }
 0x134   :  { %v405_v58 = vpop.permute.xlu1 %404  ;;  %v850_v35 = vld [vmem:[#allocation2 + $0x38] sm:$0xff]  ;;  %513 = vrot.lane.b32.xlu2 %v2222_v17, %s2339_s18 }
 0x135   :  { %v783_v10 = vpop.permute.xlu0 %782  ;;  %445 = vst.msk [vmem:[#allocation2 + $0x40] sm:$0xff] %vm436_vm5, %v405_v58  ;;  %2280 = vmatmul.msk.f32.gmra.mxu2 %vm864_vm10, %v850_v35 }
 0x136   :  { %829 = vst.msk [vmem:[#allocation2 + $0x10] sm:$0xff] %vm826_vm9, %v783_v10  ;;  %v407_v59 = vpop.permute.xlu2 %406 }
 0x137   :  { %542 = vst.msk [vmem:[#allocation2 + $0x40] sm:$0xff] %vm533_vm6, %v502_v40 }
 0x138   :  { %446 = vst.msk [vmem:[#allocation2 + $0x48] sm:$0xff] %vm436_vm5, %v407_v59 }
 0x13a   :  { %611 = vrot.lane.b32.xlu1 %v2777_v37, %s2341_s21 }
 0x13b   :  { %605 = vrot.lane.b32.xlu0 %v2749_v63, %s2341_s21 }
 0x13c   :  { %v600_v24 = vpop.permute.xlu1 %599  ;;  %703 = vrot.lane.b32.xlu2 %v2480_v13, %s2340_s20  ;;  %v2207_v13 = vld [vmem:[%s3940_s0 + $0x460] sm:$0xff] }
 0x13d   :  { %v395_v2 = vpop.permute.xlu0 %394  ;;  %640 = vst.msk [vmem:[#allocation2 + $0x40] sm:$0xff] %vm631_vm7, %v600_v24  ;;  %v845_v20 = vld [vmem:[#allocation2 + $0x10] sm:$0xff] }
 0x13e   :  { %440 = vst.msk [vmem:[#allocation2 + $0x18] sm:$0xff] %vm436_vm5, %v395_v2  ;;  %2275 = vmatmul.msk.f32.gmra.mxu0 %vm864_vm10, %v845_v20  ;;  %v510_v60 = vpop.permute.xlu2 %509 }
 0x13f   :  { %537 = vst.msk [vmem:[#allocation2 + $0x18] sm:$0xff] %vm533_vm6, %v492_v14 }
 0x142   :  { %800 = vrot.lane.b32.xlu1 %v2574_v27, %s2342_s22  ;;  %v2223_v27 = vld [vmem:[%s3940_s0 + $0x341] sm:$0xff] }
 0x143   :  { %709 = vrot.lane.b32.xlu0 %v2499_v16, %s2340_s20 }
 0x144   :  { %v590_v63 = vpop.permute.xlu1 %589  ;;  %806 = vrot.lane.b32.xlu2 %v2595_v30, %s2342_s22  ;;  %v2239_v30 = vld [vmem:[%s3940_s0 + $0x110] sm:$0xff] }
 0x145   :  { %v698_v37 = vpop.permute.xlu0 %697  ;;  %635 = vst.msk [vmem:[#allocation2 + $0x18] sm:$0xff] %vm631_vm7, %v590_v63 }
 0x146   :  { %738 = vst.msk [vmem:[#allocation2 + $0x40] sm:$0xff] %vm729_vm8, %v698_v37  ;;  %v608_v16 = vpop.permute.xlu2 %607 }
 0x147   :  { %835 = vst.msk [vmem:[#allocation2 + $0x40] sm:$0xff] %vm826_vm9, %v795_v31 }
 0x14a   :  { %515 = vrot.lane.b32.xlu1 %v2223_v27, %s2339_s18 }
 0x14b   :  { %418 = vrot.lane.b32.xlu0 %v2207_v13, %s2338_s16 }
 0x14c   :  { %v785_v46 = vpop.permute.xlu1 %784  ;;  %613 = vrot.lane.b32.xlu2 %v2239_v30, %s2341_s21 }
 0x14d   :  { %v688_v6 = vpop.permute.xlu0 %687 }
 0x14e   :  { %733 = vst.msk [vmem:[#allocation2 + $0x18] sm:$0xff] %vm729_vm8, %v688_v6  ;;  %v851_v61 = vld [vmem:[#allocation2 + $0x40] sm:$0xff]  ;;  %v706_v1 = vpop.permute.xlu2 %705 }
 0x14f   :  { %830 = vst.msk [vmem:[#allocation2 + $0x18] sm:$0xff] %vm826_vm9, %v785_v46  ;;  %2281 = vmatmul.msk.f32.gmra.mxu2 %vm864_vm10, %v851_v61 }
 0x152   :  { %808 = vrot.lane.b32.xlu1 %v2271_v0, %s2342_s22 }
 0x153   :  { %711 = vrot.lane.b32.xlu0 %v2255_v34, %s2340_s20 }
 0x154   :  { %v504_v19 = vpop.permute.xlu1 %503 }
 0x155   :  { %v413_v23 = vpop.permute.xlu0 %412  ;;  %543 = vst.msk [vmem:[#allocation2 + $0x48] sm:$0xff] %vm533_vm6, %v504_v19 }
 0x156   :  { %v846_v8 = vld [vmem:[#allocation2 + $0x18] sm:$0xff]  ;;  %449 = vst.msk [vmem:[#allocation2 + $0x60] sm:$0xff] %vm436_vm5, %v413_v23  ;;  %v803_v15 = vpop.permute.xlu2 %802 }
 0x157   :  { %2276 = vmatmul.msk.f32.gmra.mxu0 %vm864_vm10, %v846_v8  ;;  %546 = vst.msk [vmem:[#allocation2 + $0x60] sm:$0xff] %vm533_vm6, %v510_v60 }
 0x158   :  { %644 = vst.msk [vmem:[#allocation2 + $0x60] sm:$0xff] %vm631_vm7, %v608_v16 }
 0x159   :  { %742 = vst.msk [vmem:[#allocation2 + $0x60] sm:$0xff] %vm729_vm8, %v706_v1 }
 0x15a   :  { %839 = vst.msk [vmem:[#allocation2 + $0x60] sm:$0xff] %vm826_vm9, %v803_v15 }
 0x15c   :  { %v602_v32 = vpop.permute.xlu1 %601 }
 0x15d   :  { %v397_v53 = vpop.permute.xlu0 %396  ;;  %641 = vst.msk [vmem:[#allocation2 + $0x48] sm:$0xff] %vm631_vm7, %v602_v32 }
 0x15e   :  { %441 = vst.msk [vmem:[#allocation2 + $0x20] sm:$0xff] %vm436_vm5, %v397_v53  ;;  %v409_v33 = vpop.permute.xlu2 %408 }
 0x15f   :  { %447 = vst.msk [vmem:[#allocation2 + $0x50] sm:$0xff] %vm436_vm5, %v409_v33 }
 0x161   :  { %v855_v36 = vld [vmem:[#allocation2 + $0x60] sm:$0xff] }
 0x162   :  { %2285 = vmatmul.msk.f32.vlgmr.msra.gmra.mxu3 %vm864_vm10, %v855_v36 }
 0x164   :  { %v700_v38 = vpop.permute.xlu1 %699 }
 0x165   :  { %v494_v62 = vpop.permute.xlu0 %493  ;;  %739 = vst.msk [vmem:[#allocation2 + $0x48] sm:$0xff] %vm729_vm8, %v700_v38 }
 0x166   :  { %538 = vst.msk [vmem:[#allocation2 + $0x20] sm:$0xff] %vm533_vm6, %v494_v62  ;;  %v512_v9 = vpop.permute.xlu2 %511 }
 0x16c   :  { %v797_v42 = vpop.permute.xlu1 %796 }
 0x16d   :  { %v592_v12 = vpop.permute.xlu0 %591  ;;  %836 = vst.msk [vmem:[#allocation2 + $0x48] sm:$0xff] %vm826_vm9, %v797_v42 }
 0x16e   :  { %636 = vst.msk [vmem:[#allocation2 + $0x20] sm:$0xff] %vm631_vm7, %v592_v12  ;;  %v610_v26 = vpop.permute.xlu2 %609 }
 0x174   :  { %v787_v41 = vpop.permute.xlu1 %786  ;;  %v852_v29 = vld [vmem:[#allocation2 + $0x48] sm:$0xff] }
 0x175   :  { %v690_v43 = vpop.permute.xlu0 %689  ;;  %2282 = vmatmul.msk.f32.gmra.mxu2 %vm864_vm10, %v852_v29 }
 0x176   :  { %734 = vst.msk [vmem:[#allocation2 + $0x20] sm:$0xff] %vm729_vm8, %v690_v43  ;;  %v708_v5 = vpop.permute.xlu2 %707 }
 0x177   :  { %831 = vst.msk [vmem:[#allocation2 + $0x20] sm:$0xff] %vm826_vm9, %v787_v41 }
 0x17c   :  { %v506_v22 = vpop.permute.xlu1 %505 }
 0x17d   :  { %v415_v44 = vpop.permute.xlu0 %414  ;;  %544 = vst.msk [vmem:[#allocation2 + $0x50] sm:$0xff] %vm533_vm6, %v506_v22 }
 0x17e   :  { %v847_v45 = vld [vmem:[#allocation2 + $0x20] sm:$0xff]  ;;  %450 = vst.msk [vmem:[#allocation2 + $0x68] sm:$0xff] %vm436_vm5, %v415_v44  ;;  %v805_v48 = vpop.permute.xlu2 %804 }
 0x17f   :  { %2277 = vmatmul.msk.f32.gmra.mxu0 %vm864_vm10, %v847_v45  ;;  %547 = vst.msk [vmem:[#allocation2 + $0x68] sm:$0xff] %vm533_vm6, %v512_v9 }
 0x180   :  { %645 = vst.msk [vmem:[#allocation2 + $0x68] sm:$0xff] %vm631_vm7, %v610_v26 }
 0x181   :  { %743 = vst.msk [vmem:[#allocation2 + $0x68] sm:$0xff] %vm729_vm8, %v708_v5 }
 0x182   :  { %840 = vst.msk [vmem:[#allocation2 + $0x68] sm:$0xff] %vm826_vm9, %v805_v48 }
 0x184   :  { %v604_v49 = vpop.permute.xlu1 %603 }
 0x185   :  { %v399_v50 = vpop.permute.xlu0 %398  ;;  %642 = vst.msk [vmem:[#allocation2 + $0x50] sm:$0xff] %vm631_vm7, %v604_v49  ;;  %v3171_v60 = vpop.f32.mrf.mxu0 }
 0x186   :  { %442 = vst.msk [vmem:[#allocation2 + $0x28] sm:$0xff] %vm436_vm5, %v399_v50  ;;  %v411_v39 = vpop.permute.xlu2 %410  ;;  %v1021_v6 = vmul.f32 %v3171_v60, %v3171_v60  ;;  %v983_v0 = vsel %vm982_vm11, %v3171_v60, 0.0 }
 0x187   :  { %448 = vst.msk [vmem:[#allocation2 + $0x58] sm:$0xff] %vm436_vm5, %v411_v39 }
 0x188   :  { %v1037_v53 = vsel %vm982_vm11, %v1021_v6, 0.0 }
 0x189   :  { %v856_v51 = vld [vmem:[#allocation2 + $0x68] sm:$0xff] }
 0x18a   :  { %2286 = vmatmul.msk.f32.gmra.mxu3 %vm864_vm10, %v856_v51 }
 0x18c   :  { %v702_v3 = vpop.permute.xlu1 %701 }
 0x18d   :  { %v496_v52 = vpop.permute.xlu0 %495  ;;  %740 = vst.msk [vmem:[#allocation2 + $0x50] sm:$0xff] %vm729_vm8, %v702_v3 }
 0x18e   :  { %539 = vst.msk [vmem:[#allocation2 + $0x28] sm:$0xff] %vm533_vm6, %v496_v52  ;;  %v514_v40 = vpop.permute.xlu2 %513 }
 0x194   :  { %v799_v4 = vpop.permute.xlu1 %798 }
 0x195   :  { %v594_v55 = vpop.permute.xlu0 %593  ;;  %837 = vst.msk [vmem:[#allocation2 + $0x50] sm:$0xff] %vm826_vm9, %v799_v4 }
 0x196   :  { %637 = vst.msk [vmem:[#allocation2 + $0x28] sm:$0xff] %vm631_vm7, %v594_v55  ;;  %v704_v28 = vpop.permute.xlu2 %703 }
 0x19c   :  { %v789_v18 = vpop.permute.xlu1 %788  ;;  %v853_v56 = vld [vmem:[#allocation2 + $0x50] sm:$0xff]  ;;  %v3173_v63 = vpop.f32.mrf.mxu0 }
 0x19d   :  { %v692_v25 = vpop.permute.xlu0 %691  ;;  %2283 = vmatmul.msk.f32.gmra.mxu2 %vm864_vm10, %v853_v56  ;;  %v1022_v46 = vmul.f32 %v3173_v63, %v3173_v63  ;;  %v984_v61 = vsel %vm982_vm11, %v3173_v63, 0.0 }
 0x19e   :  { %735 = vst.msk [vmem:[#allocation2 + $0x28] sm:$0xff] %vm729_vm8, %v692_v25  ;;  %v807_v21 = vpop.permute.xlu2 %806  ;;  %v985_v8 = vadd.f32 %v984_v61, %v983_v0 }
 0x19f   :  { %832 = vst.msk [vmem:[#allocation2 + $0x28] sm:$0xff] %vm826_vm9, %v789_v18  ;;  %v1038_v1 = vsel %vm982_vm11, %v1022_v46, 0.0 }
 0x1a0   :  { %v1039_v62 = vadd.f32 %v1038_v1, %v1037_v53 }
 0x1a1   :  { %v3177_v13 = vpop.f32.mrf.mxu2 }
 0x1a2   :  { %v1027_v39 = vmul.f32 %v3177_v13, %v3177_v13  ;;  %v994_v3 = vsel %vm982_vm11, %v3177_v13, 0.0 }
 0x1a4   :  { %v508_v11 = vpop.permute.xlu1 %507  ;;  %v1048_v4 = vsel %vm982_vm11, %v1027_v39, 0.0 }
 0x1a5   :  { %545 = vst.msk [vmem:[#allocation2 + $0x58] sm:$0xff] %vm533_vm6, %v508_v11  ;;  %v417_v57 = vpop.permute.xlu0 %416 }
 0x1a6   :  { %451 = vst.msk [vmem:[#allocation2 + $0x70] sm:$0xff] %vm436_vm5, %v417_v57  ;;  %v848_v14 = vld [vmem:[#allocation2 + $0x28] sm:$0xff]  ;;  %v614_v35 = vpop.permute.xlu2 %613 }
 0x1a7   :  { %2278 = vmatmul.msk.f32.gmra.mxu0 %vm864_vm10, %v848_v14  ;;  %548 = vst.msk [vmem:[#allocation2 + $0x70] sm:$0xff] %vm533_vm6, %v514_v40 }
 0x1ac   :  { %v612_v47 = vpop.permute.xlu1 %611 }
 0x1ad   :  { %646 = vst.msk [vmem:[#allocation2 + $0x70] sm:$0xff] %vm631_vm7, %v612_v47  ;;  %v606_v54 = vpop.permute.xlu0 %605 }
 0x1ae   :  { %643 = vst.msk [vmem:[#allocation2 + $0x58] sm:$0xff] %vm631_vm7, %v606_v54 }
 0x1af   :  { %741 = vst.msk [vmem:[#allocation2 + $0x58] sm:$0xff] %vm729_vm8, %v704_v28 }
 0x1b4   :  { %v801_v7 = vpop.permute.xlu1 %800 }
 0x1b5   :  { %838 = vst.msk [vmem:[#allocation2 + $0x58] sm:$0xff] %vm826_vm9, %v801_v7  ;;  %v710_v31 = vpop.permute.xlu0 %709 }
 0x1b6   :  { %744 = vst.msk [vmem:[#allocation2 + $0x70] sm:$0xff] %vm729_vm8, %v710_v31 }
 0x1b7   :  { %841 = vst.msk [vmem:[#allocation2 + $0x70] sm:$0xff] %vm826_vm9, %v807_v21 }
 0x1b8   :  { %v3181_v16 = vpop.f32.mrf.mxu2 }
 0x1b9   :  { %v1028_v55 = vmul.f32 %v3181_v16, %v3181_v16  ;;  %v996_v56 = vsel %vm982_vm11, %v3181_v16, 0.0 }
 0x1bb   :  { %v3175_v37 = vpop.f32.mrf.mxu0  ;;  %v1050_v11 = vsel %vm982_vm11, %v1028_v55, 0.0 }
 0x1bc   :  { %v516_v17 = vpop.permute.xlu1 %515  ;;  %v854_v58 = vld [vmem:[#allocation2 + $0x58] sm:$0xff]  ;;  %v1023_v34 = vmul.f32 %v3175_v37, %v3175_v37  ;;  %v986_v19 = vsel %vm982_vm11, %v3175_v37, 0.0 }
 0x1bd   :  { %v419_v10 = vpop.permute.xlu0 %418  ;;  %2284 = vmatmul.msk.f32.gmra.mxu2 %vm864_vm10, %v854_v58  ;;  %v987_v9 = vadd.f32 %v986_v19, %v985_v8 }
 0x1be   :  { %452 = vst.msk [vmem:[#allocation2 + $0x78] sm:$0xff] %vm436_vm5, %v419_v10  ;;  %v857_v59 = vld [vmem:[#allocation2 + $0x70] sm:$0xff]  ;;  %v1040_v33 = vsel %vm982_vm11, %v1023_v34, 0.0  ;;  %vm1715_vm5 = vcmask 392512  }
 0x1bf   :  { %549 = vst.msk [vmem:[#allocation2 + $0x78] sm:$0xff] %vm533_vm6, %v516_v17  ;;  %2287 = vmatmul.msk.f32.gmra.mxu3 %vm864_vm10, %v857_v59  ;;  %v1041_v41 = vadd.f32 %v1040_v33, %v1039_v62  ;;  %vm1813_vm6 = vcmask 458112  }
 0x1c0   :  { %647 = vst.msk [vmem:[#allocation2 + $0x78] sm:$0xff] %vm631_vm7, %v614_v35  ;;  %vm1910_vm7 = vcmask 523712  }
 0x1c4   :  { %v809_v24 = vpop.permute.xlu1 %808 }
 0x1c5   :  { %v712_v2 = vpop.permute.xlu0 %711 }
 0x1c6   :  { %745 = vst.msk [vmem:[#allocation2 + $0x78] sm:$0xff] %vm729_vm8, %v712_v2  ;;  %vm2007_vm8 = vcmask 589312  }
 0x1c7   :  { %842 = vst.msk [vmem:[#allocation2 + $0x78] sm:$0xff] %vm826_vm9, %v809_v24  ;;  %vm2041_vm9 = vcmask 588800  }
 0x1ce   :  { %v858_v20 = vld [vmem:[#allocation2 + $0x78] sm:$0xff] }
 0x1cf   :  { %2288 = vmatmul.msk.f32.gmra.mxu3 %vm864_vm10, %v858_v20 }
 0x1d2   :  { %v3200_v15 = vpop.f32.mrf.mxu2 }
 0x1d3   :  { %v1029_v57 = vmul.f32 %v3200_v15, %v3200_v15  ;;  %v998_v47 = vsel %vm982_vm11, %v3200_v15, 0.0 }
 0x1d4   :  { %v3179_v27 = vpop.f32.mrf.mxu0 }
 0x1d5   :  { %v1024_v23 = vmul.f32 %v3179_v27, %v3179_v27  ;;  %v988_v36 = vsel %vm982_vm11, %v3179_v27, 0.0  ;;  %v1052_v21 = vsel %vm982_vm11, %v1029_v57, 0.0 }
 0x1d6   :  { %v989_v43 = vadd.f32 %v988_v36, %v987_v9 }
 0x1d7   :  { %v1042_v42 = vsel %vm982_vm11, %v1024_v23, 0.0 }
 0x1d8   :  { %v1043_v22 = vadd.f32 %v1042_v42, %v1041_v41 }
 0x1e5   :  { %v3235_v14 = vpop.f32.mrf.mxu3 }
 0x1e6   :  { %v1033_v23 = vmul.f32 %v3235_v14, %v3235_v14  ;;  %v1006_v53 = vsel %vm982_vm11, %v3235_v14, 0.0 }
 0x1f8   :  { %v3219_v48 = vpop.f32.mrf.mxu2 }
 0x1f9   :  { %v1030_v7 = vmul.f32 %v3219_v48, %v3219_v48  ;;  %v1000_v17 = vsel %vm982_vm11, %v3219_v48, 0.0 }
 0x1fb   :  { %v1054_v35 = vsel %vm982_vm11, %v1030_v7, 0.0 }
 0x1fc   :  { %v3183_v30 = vpop.f32.mrf.mxu0 }
 0x1fd   :  { %v1025_v38 = vmul.f32 %v3183_v30, %v3183_v30  ;;  %v990_v12 = vsel %vm982_vm11, %v3183_v30, 0.0 }
 0x1fe   :  { %v991_v44 = vadd.f32 %v990_v12, %v989_v43 }
 0x1ff   :  { %v1044_v29 = vsel %vm982_vm11, %v1025_v38, 0.0  ;;  %v1060_v38 = vsel %vm982_vm11, %v1033_v23, 0.0 }
 0x200   :  { %v1045_v49 = vadd.f32 %v1044_v29, %v1043_v22 }
 0x20d   :  { %v3251_v2 = vpop.f32.mrf.mxu3 }
 0x20e   :  { %v1034_v62 = vmul.f32 %v3251_v2, %v3251_v2  ;;  %v1008_v42 = vsel %vm982_vm11, %v3251_v2, 0.0 }
 0x210   :  { %v1062_v41 = vsel %vm982_vm11, %v1034_v62, 0.0 }
 0x220   :  { %v3230_v25 = vpop.f32.mrf.mxu2 }
 0x221   :  { %v1031_v59 = vmul.f32 %v3230_v25, %v3230_v25  ;;  %v1002_v46 = vsel %vm982_vm11, %v3230_v25, 0.0 }
 0x223   :  { %v1056_v34 = vsel %vm982_vm11, %v1031_v59, 0.0 }
 0x224   :  { %v3202_v32 = vpop.f32.mrf.mxu0 }
 0x225   :  { %v1026_v26 = vmul.f32 %v3202_v32, %v3202_v32  ;;  %v992_v5 = vsel %vm982_vm11, %v3202_v32, 0.0 }
 0x226   :  { %v993_v50 = vadd.f32 %v992_v5, %v991_v44 }
 0x227   :  { %v1046_v45 = vsel %vm982_vm11, %v1026_v26, 0.0 }
 0x228   :  { %v1047_v51 = vadd.f32 %v1046_v45, %v1045_v49  ;;  %v995_v52 = vadd.f32 %v994_v3, %v993_v50 }
 0x22a   :  { %v1049_v18 = vadd.f32 %v1048_v4, %v1047_v51  ;;  %v997_v40 = vadd.f32 %v996_v56, %v995_v52 }
 0x22c   :  { %v1051_v28 = vadd.f32 %v1050_v11, %v1049_v18  ;;  %v999_v54 = vadd.f32 %v998_v47, %v997_v40 }
 0x22e   :  { %v1053_v31 = vadd.f32 %v1052_v21, %v1051_v28  ;;  %v1001_v10 = vadd.f32 %v1000_v17, %v999_v54  ;;  %v2343_v21 = vmov 0.0  }
 0x22f   :  { %1147 = vst.msk [vmem:[#allocation4] sm:$0xff] %vm982_vm11, %v2343_v21 }
 0x230   :  { %v1055_v20 = vadd.f32 %v1054_v35, %v1053_v31  ;;  %v1003_v61 = vadd.f32 %v1002_v46, %v1001_v10  ;;  %1149 = vst.msk [vmem:[#allocation4 + $0x8] sm:$0x3] %vm1148_vm12, %v2343_v21 }
 0x231   :  { %1150 = vst.msk [vmem:[#allocation4 + $0xa0] sm:$0xff] %vm982_vm11, %v2343_v21 }
 0x232   :  { %v1057_v19 = vadd.f32 %v1056_v34, %v1055_v20  ;;  %1151 = vst.msk [vmem:[#allocation4 + $0xa8] sm:$0x3] %vm1148_vm12, %v2343_v21 }
 0x233   :  { %1153 = vst.msk [vmem:[#allocation4 + $0x90] sm:$0xff] %vm982_vm11, %v2343_v21 }
 0x234   :  { %1154 = vst.msk [vmem:[#allocation4 + $0x98] sm:$0x3] %vm1148_vm12, %v2343_v21 }
 0x235   :  { %1155 = vst.msk [vmem:[#allocation4 + $0x130] sm:$0xff] %vm982_vm11, %v2343_v21 }
 0x236   :  { %1156 = vst.msk [vmem:[#allocation4 + $0x138] sm:$0x3] %vm1148_vm12, %v2343_v21 }
 0x237   :  { %1179 = vst.msk [vmem:[#allocation4 + $0x19] sm:$0x1] %vm1157_vm13, %v2343_v21 }
 0x238   :  { %1158 = vst.msk [vmem:[#allocation4] sm:$0x1] %vm1157_vm13, %v2343_v21 }
 0x239   :  { %v1255_v20 = vld [vmem:[#allocation4 + $0xa1] sm:$0xff]  ;;  %1159 = vst.msk [vmem:[#allocation4 + $0x10] sm:$0x1] %vm1157_vm13, %v2343_v21 }
 0x23a   :  { %1295 = vrot.lane.b32.xlu1 %v1255_v20, %s2336_s19  ;;  %1160 = vst.msk [vmem:[#allocation4 + $0x20] sm:$0x1] %vm1157_vm13, %v2343_v21 }
 0x23b   :  { %1161 = vst.msk [vmem:[#allocation4 + $0x30] sm:$0x1] %vm1157_vm13, %v2343_v21 }
 0x23c   :  { %1162 = vst.msk [vmem:[#allocation4 + $0x40] sm:$0x1] %vm1157_vm13, %v2343_v21 }
 0x23d   :  { %1163 = vst.msk [vmem:[#allocation4 + $0x50] sm:$0x1] %vm1157_vm13, %v2343_v21 }
 0x23e   :  { %1164 = vst.msk [vmem:[#allocation4 + $0x60] sm:$0x1] %vm1157_vm13, %v2343_v21 }
 0x23f   :  { %1165 = vst.msk [vmem:[#allocation4 + $0x70] sm:$0x1] %vm1157_vm13, %v2343_v21 }
 0x240   :  { %v3244_v58 = vpop.f32.mrf.mxu2  ;;  %1166 = vst.msk [vmem:[#allocation4 + $0x80] sm:$0x1] %vm1157_vm13, %v2343_v21 }
 0x241   :  { %v1032_v24 = vmul.f32 %v3244_v58, %v3244_v58  ;;  %v1004_v6 = vsel %vm982_vm11, %v3244_v58, 0.0  ;;  %1167 = vst.msk [vmem:[#allocation4 + $0x90] sm:$0x1] %vm1157_vm13, %v2343_v21 }
 0x242   :  { %v1005_v1 = vadd.f32 %v1004_v6, %v1003_v61  ;;  %v3263_v36 = vpop.f32.mrf.mxu3  ;;  %1168 = vst.msk [vmem:[#allocation4 + $0xa0] sm:$0x1] %vm1157_vm13, %v2343_v21 }
 0x243   :  { %v1058_v0 = vsel %vm982_vm11, %v1032_v24, 0.0  ;;  %v1035_v12 = vmul.f32 %v3263_v36, %v3263_v36  ;;  %v1010_v43 = vsel %vm982_vm11, %v3263_v36, 0.0  ;;  %v1247_v24 = vld [vmem:[#allocation4 + $0x1] sm:$0xff]  ;;  %1169 = vst.msk [vmem:[#allocation4 + $0xb0] sm:$0x1] %vm1157_vm13, %v2343_v21 }
 0x244   :  { %v1059_v8 = vadd.f32 %v1058_v0, %v1057_v19  ;;  %v1007_v33 = vadd.f32 %v1006_v53, %v1005_v1  ;;  %1279 = vrot.lane.b32.xlu2 %v1247_v24, %s2336_s19  ;;  %v1077_v1 = vld [vmem:[%s3942_s3] sm:$0x1]  ;;  %1170 = vst.msk [vmem:[#allocation4 + $0xc0] sm:$0x1] %vm1157_vm13, %v2343_v21  ;;  %s2344_s3 = smov 40  }
 0x245   :  { %v1064_v5 = vsel %vm982_vm11, %v1035_v12, 0.0  ;;  %v1090_v53 = vld [vmem:[%s3943_s4] sm:$0x1]  ;;  %1171 = vst.msk [vmem:[#allocation4 + $0xd0] sm:$0x1] %vm1157_vm13, %v2343_v21  ;;  %s2345_s4 = smov 48  }
 0x246   :  { %v1061_v9 = vadd.f32 %v1060_v38, %v1059_v8  ;;  %v1009_v26 = vadd.f32 %v1008_v42, %v1007_v33  ;;  %1172 = vst.msk [vmem:[#allocation4 + $0xe0] sm:$0x1] %vm1157_vm13, %v2343_v21 }
 0x247   :  { %1173 = vst.msk [vmem:[#allocation4 + $0xf0] sm:$0x1] %vm1157_vm13, %v2343_v21 }
 0x248   :  { %v1063_v29 = vadd.f32 %v1062_v41, %v1061_v9  ;;  %v1011_v22 = vadd.f32 %v1010_v43, %v1009_v26  ;;  %1174 = vst.msk [vmem:[#allocation4 + $0x100] sm:$0x1] %vm1157_vm13, %v2343_v21 }
 0x249   :  { %1175 = vst.msk [vmem:[#allocation4 + $0x110] sm:$0x1] %vm1157_vm13, %v2343_v21 }
 0x24a   :  { %v1065_v50 = vadd.f32 %v1064_v5, %v1063_v29  ;;  %1176 = vst.msk [vmem:[#allocation4 + $0x120] sm:$0x1] %vm1157_vm13, %v2343_v21 }
 0x24b   :  { %1177 = vst.msk [vmem:[#allocation4 + $0x130] sm:$0x1] %vm1157_vm13, %v2343_v21 }
 0x24c   :  { %1178 = vst.msk [vmem:[#allocation4 + $0x9] sm:$0x1] %vm1157_vm13, %v2343_v21 }
 0x24d   :  { %1180 = vst.msk [vmem:[#allocation4 + $0x29] sm:$0x1] %vm1157_vm13, %v2343_v21 }
 0x24e   :  { %1181 = vst.msk [vmem:[#allocation4 + $0x39] sm:$0x1] %vm1157_vm13, %v2343_v21 }
 0x24f   :  { %1182 = vst.msk [vmem:[#allocation4 + $0x49] sm:$0x1] %vm1157_vm13, %v2343_v21 }
 0x250   :  { %1183 = vst.msk [vmem:[#allocation4 + $0x59] sm:$0x1] %vm1157_vm13, %v2343_v21 }
 0x251   :  { %1184 = vst.msk [vmem:[#allocation4 + $0x69] sm:$0x1] %vm1157_vm13, %v2343_v21 }
 0x252   :  { %v3276_v44 = vpop.f32.mrf.mxu3  ;;  %1185 = vst.msk [vmem:[#allocation4 + $0x79] sm:$0x1] %vm1157_vm13, %v2343_v21 }
 0x253   :  { %v1012_v45 = vsel %vm982_vm11, %v3276_v44, 0.0  ;;  %v1036_v49 = vmul.f32 %v3276_v44, %v3276_v44  ;;  %1186 = vst.msk [vmem:[#allocation4 + $0x89] sm:$0x1] %vm1157_vm13, %v2343_v21 }
 0x254   :  { %v1013_v39 = vadd.f32 %v1012_v45, %v1011_v22  ;;  %1187 = vst.msk [vmem:[#allocation4 + $0x99] sm:$0x1] %vm1157_vm13, %v2343_v21 }
 0x255   :  { %v1066_v51 = vsel %vm982_vm11, %v1036_v49, 0.0  ;;  %1188 = vst.msk [vmem:[#allocation4 + $0xa9] sm:$0x1] %vm1157_vm13, %v2343_v21 }
 0x256   :  { %v1014_v3 = vrot.slane %v1013_v39, 4  ;;  %v1067_v52 = vadd.f32 %v1066_v51, %v1065_v50  ;;  %1189 = vst.msk [vmem:[#allocation4 + $0xb9] sm:$0x1] %vm1157_vm13, %v2343_v21 }
 0x257   :  { %1190 = vst.msk [vmem:[#allocation4 + $0xc9] sm:$0x1] %vm1157_vm13, %v2343_v21 }
 0x258   :  { %v1015_v4 = vadd.f32 %v1014_v3, %v1013_v39  ;;  %v1068_v55 = vrot.slane %v1067_v52, 4  ;;  %1191 = vst.msk [vmem:[#allocation4 + $0xd9] sm:$0x1] %vm1157_vm13, %v2343_v21 }
 0x259   :  { %1192 = vst.msk [vmem:[#allocation4 + $0xe9] sm:$0x1] %vm1157_vm13, %v2343_v21 }
 0x25a   :  { %v1016_v18 = vrot.slane %v1015_v4, 2  ;;  %v1069_v56 = vadd.f32 %v1068_v55, %v1067_v52  ;;  %1193 = vst.msk [vmem:[#allocation4 + $0xf9] sm:$0x1] %vm1157_vm13, %v2343_v21 }
 0x25b   :  { %1194 = vst.msk [vmem:[#allocation4 + $0x109] sm:$0x1] %vm1157_vm13, %v2343_v21 }
 0x25c   :  { %v1017_v40 = vadd.f32 %v1016_v18, %v1015_v4  ;;  %v1070_v11 = vrot.slane %v1069_v56, 2  ;;  %1195 = vst.msk [vmem:[#allocation4 + $0x119] sm:$0x1] %vm1157_vm13, %v2343_v21 }
 0x25d   :  { %1196 = vst.msk [vmem:[#allocation4 + $0x129] sm:$0x1] %vm1157_vm13, %v2343_v21 }
 0x25e   :  { %v1018_v57 = vrot.slane %v1017_v40, 1  ;;  %v1071_v28 = vadd.f32 %v1070_v11, %v1069_v56  ;;  %1197 = vst.msk [vmem:[#allocation4 + $0x139] sm:$0x1] %vm1157_vm13, %v2343_v21 }
 0x260   :  { %v1019_v47 = vadd.f32 %v1018_v57, %v1017_v40  ;;  %v1072_v54 = vrot.slane %v1071_v28, 1 }
 0x262   :  { %v1020_v7 = vmul.f32 0.0078125, %v1019_v47  ;;  %v1073_v31 = vadd.f32 %v1072_v54, %v1071_v28 }
 0x264   :  { %v1074_v17 = vmul.f32 0.0078125, %v1073_v31  ;;  %v1075_v10 = vmul.f32 %v1020_v7, %v1020_v7 }
 0x266   :  { %v1076_v35 = vsub.f32 %v1074_v17, %v1075_v10 }
 0x268   :  { %v1078_v59 = vadd.f32 1e-05, %v1076_v35 }
 0x26a   :  { %2331 = vrsqrt.f32 %v1078_v59  ;;  %vm1085_vm15 = vweird.f32 %v1078_v59 }
 0x270   :  { %v2332_v46 = vpop.eup %2331 }
 0x271   :  { %v1080_v6 = vmul.f32 %v2332_v46, %v1078_v59  ;;  %vm1086_vm14 = vweird.f32 %v2332_v46 }
 0x272   :  { %vm1087_vm0 = vmor %vm1085_vm15, %vm1086_vm14 }
 0x273   :  { %v1081_v61 = vmul.f32 %v2332_v46, %v1080_v6 }
 0x275   :  { %v1082_v34 = vmul.f32 0.5, %v1081_v61 }
 0x277   :  { %v1083_v0 = vsub.f32 1.5, %v1082_v34 }
 0x279   :  { %v1084_v19 = vmul.f32 %v2332_v46, %v1083_v0 }
 0x27b   :  { %v1088_v23 = vsel %vm1087_vm0, %v2332_v46, %v1084_v19 }
 0x27c   :  { %v1089_v8 = vmul.f32 %v1088_v23, %v1077_v1 }
 0x27e   :  { %v1091_v33 = vmul.f32 %v1089_v8, %v1020_v7  ;;  %v3325_v38 = vperm.slane %v1089_v8, 0 }
 0x280   :  { %v1092_v62 = vsub.f32 %v1090_v53, %v1091_v33  ;;  %v1111_v9 = vmul.f32 %v3325_v38, %v3276_v44  ;;  %v1098_v12 = vmul.f32 %v3325_v38, %v3175_v37  ;;  %v1097_v26 = vmul.f32 %v3325_v38, %v3173_v63 }
 0x281   :  { %v1096_v41 = vmul.f32 %v3325_v38, %v3171_v60  ;;  %v1101_v43 = vmul.f32 %v3325_v38, %v3202_v32  ;;  %v1100_v29 = vmul.f32 %v3325_v38, %v3183_v30  ;;  %v1099_v5 = vmul.f32 %v3325_v38, %v3179_v27 }
 0x282   :  { %v3337_v42 = vperm.slane %v1092_v62, 0  ;;  %v1104_v27 = vmul.f32 %v3325_v38, %v3200_v15  ;;  %v1106_v44 = vmul.f32 %v3325_v38, %v3230_v25  ;;  %v1102_v15 = vmul.f32 %v3325_v38, %v3177_v13 }
 0x283   :  { %v1107_v4 = vmul.f32 %v3325_v38, %v3244_v58  ;;  %v1109_v56 = vmul.f32 %v3325_v38, %v3251_v2  ;;  %v1105_v11 = vmul.f32 %v3325_v38, %v3219_v48  ;;  %v1110_v28 = vmul.f32 %v3325_v38, %v3263_v36 }
 0x284   :  { %v1130_v63 = vadd.f32 %v3337_v42, %v1111_v9  ;;  %v1117_v37 = vadd.f32 %v3337_v42, %v1098_v12  ;;  %v1116_v60 = vadd.f32 %v3337_v42, %v1097_v26  ;;  %v1115_v22 = vadd.f32 %v3337_v42, %v1096_v41 }
 0x285   :  { %v1120_v32 = vadd.f32 %v3337_v42, %v1101_v43  ;;  %v1119_v30 = vadd.f32 %v3337_v42, %v1100_v29  ;;  %v1118_v39 = vadd.f32 %v3337_v42, %v1099_v5  ;;  %v1123_v3 = vadd.f32 %v3337_v42, %v1104_v27 }
 0x286   :  { %v1146_v45 = vmax.f32 %v1130_v63, 0.0  ;;  %v1133_v49 = vmax.f32 %v1117_v37, 0.0  ;;  %v1132_v50 = vmax.f32 %v1116_v60, 0.0  ;;  %v1131_v51 = vmax.f32 %v1115_v22, 0.0 }
 0x287   :  { %v1136_v25 = vmax.f32 %v1120_v32, 0.0  ;;  %v1125_v52 = vadd.f32 %v3337_v42, %v1106_v44  ;;  %v1135_v55 = vmax.f32 %v1119_v30, 0.0  ;;  %v1121_v18 = vadd.f32 %v3337_v42, %v1102_v15  ;;  %v1344_v44 = vld [vmem:[#allocation4 + $0x2] sm:$0xff]  ;;  %v1748_v15 = vld [vmem:[#allocation4 + $0x130] sm:$0xff] }
 0x288   :  { %1214 = vst.msk [vmem:[#allocation4 + $0x121] sm:$0xff] %vm982_vm11, %v1146_v45  ;;  %v1134_v13 = vmax.f32 %v1118_v39, 0.0  ;;  %v1126_v40 = vadd.f32 %v3337_v42, %v1107_v4  ;;  %v1139_v57 = vmax.f32 %v1123_v3, 0.0  ;;  %v1128_v58 = vadd.f32 %v3337_v42, %v1109_v56 }
 0x289   :  { %1201 = vst.msk [vmem:[#allocation4 + $0x31] sm:$0xff] %vm982_vm11, %v1133_v49  ;;  %v1141_v47 = vmax.f32 %v1125_v52, 0.0  ;;  %v1124_v2 = vadd.f32 %v3337_v42, %v1105_v11  ;;  %v1137_v54 = vmax.f32 %v1121_v18, 0.0  ;;  %v1129_v7 = vadd.f32 %v3337_v42, %v1110_v28  ;;  %v1845_v18 = vld [vmem:[#allocation4 + $0x131] sm:$0xff] }
 0x28a   :  { %1200 = vst.msk [vmem:[#allocation4 + $0x21] sm:$0xff] %vm982_vm11, %v1132_v50  ;;  %v1142_v48 = vmax.f32 %v1126_v40, 0.0  ;;  %v1144_v31 = vmax.f32 %v1128_v58, 0.0  ;;  %v1108_v34 = vmul.f32 %v3325_v38, %v3235_v14  ;;  %v1103_v29 = vmul.f32 %v3325_v38, %v3181_v16 }
 0x28b   :  { %1199 = vst.msk [vmem:[#allocation4 + $0x11] sm:$0xff] %vm982_vm11, %v1131_v51  ;;  %v1140_v36 = vmax.f32 %v1124_v2, 0.0  ;;  %v1145_v35 = vmax.f32 %v1129_v7, 0.0  ;;  %v1215_v51 = vld [vmem:[#allocation4] sm:$0xff] }
 0x28c   :  { %1204 = vst.msk [vmem:[#allocation4 + $0x61] sm:$0xff] %vm982_vm11, %v1136_v25  ;;  %v1127_v1 = vadd.f32 %v3337_v42, %v1108_v34  ;;  %v1122_v16 = vadd.f32 %v3337_v42, %v1103_v29 }
 0x28d   :  { %1203 = vst.msk [vmem:[#allocation4 + $0x51] sm:$0xff] %vm982_vm11, %v1135_v55  ;;  %v1942_v55 = vld [vmem:[#allocation4 + $0x132] sm:$0xff] }
 0x28e   :  { %1202 = vst.msk [vmem:[#allocation4 + $0x41] sm:$0xff] %vm982_vm11, %v1134_v13  ;;  %v1143_v14 = vmax.f32 %v1127_v1, 0.0  ;;  %v1138_v42 = vmax.f32 %v1122_v16, 0.0  ;;  %v1223_v13 = vld [vmem:[#allocation4 + $0xa0] sm:$0xff] }
 0x28f   :  { %1207 = vst.msk [vmem:[#allocation4 + $0xb1] sm:$0xff] %vm982_vm11, %v1139_v57  ;;  %v1553_v50 = vld [vmem:[#allocation4 + $0x121] sm:$0xff] }
 0x290   :  { %v3399_v17 = vld [vmem:[#allocation4 + $0x31] sm:$0xff]  ;;  %1209 = vst.msk [vmem:[#allocation4 + $0xd1] sm:$0xff] %vm982_vm11, %v1141_v47  ;;  %v1650_v25 = vld [vmem:[#allocation4 + $0x122] sm:$0xff] }
 0x291   :  { %1285 = vrot.lane.b32.xlu2 %v3399_v17, %s2336_s19  ;;  %v1249_v10 = vld [vmem:[#allocation4 + $0x21] sm:$0xff]  ;;  %1205 = vst.msk [vmem:[#allocation4 + $0x71] sm:$0xff] %vm982_vm11, %v1137_v54  ;;  %v3484_v8 = vld [vmem:[#allocation4 + $0x30] sm:$0xff] }
 0x292   :  { %1283 = vrot.lane.b32.xlu1 %v1249_v10, %s2336_s19  ;;  %v1248_v59 = vld [vmem:[#allocation4 + $0x11] sm:$0xff]  ;;  %1210 = vst.msk [vmem:[#allocation4 + $0xe1] sm:$0xff] %vm982_vm11, %v1142_v48  ;;  %v3505_v12 = vld [vmem:[#allocation4 + $0x20] sm:$0xff] }
 0x293   :  { %1281 = vrot.lane.b32.xlu0 %v1248_v59, %s2336_s19  ;;  %1212 = vst.msk [vmem:[#allocation4 + $0x101] sm:$0xff] %vm982_vm11, %v1144_v31  ;;  %v3415_v24 = vld [vmem:[#allocation4 + $0x61] sm:$0xff]  ;;  %v3509_v21 = vld [vmem:[#allocation4 + $0x10] sm:$0xff] }
 0x294   :  { %1208 = vst.msk [vmem:[#allocation4 + $0xc1] sm:$0xff] %vm982_vm11, %v1140_v36  ;;  %v3421_v20 = vld [vmem:[#allocation4 + $0x51] sm:$0xff]  ;;  %v3492_v33 = vld [vmem:[#allocation4 + $0x60] sm:$0xff] }
 0x295   :  { %1213 = vst.msk [vmem:[#allocation4 + $0x111] sm:$0xff] %vm982_vm11, %v1145_v35  ;;  %v3427_v46 = vld [vmem:[#allocation4 + $0x41] sm:$0xff]  ;;  %v3519_v43 = vld [vmem:[#allocation4 + $0x50] sm:$0xff] }
 0x296   :  { %v3443_v6 = vld [vmem:[#allocation4 + $0xb1] sm:$0xff]  ;;  %1211 = vst.msk [vmem:[#allocation4 + $0xf1] sm:$0xff] %vm982_vm11, %v1143_v14  ;;  %v3529_v63 = vld [vmem:[#allocation4 + $0x40] sm:$0xff] }
 0x297   :  { %v3449_v61 = vld [vmem:[#allocation4 + $0xd1] sm:$0xff]  ;;  %1234 = vst.msk [vmem:[#allocation3 + $0x18] sm:$0xff] %vm982_vm11, %v3484_v8  ;;  %v3560_v27 = vld [vmem:[#allocation4 + $0x22] sm:$0xff] }
 0x298   :  { %v3457_v0 = vld [vmem:[#allocation4 + $0x71] sm:$0xff]  ;;  %1237 = vst.msk [vmem:[#allocation3 + $0x30] sm:$0xff] %vm982_vm11, %v3492_v33  ;;  %v3566_v45 = vld [vmem:[#allocation4 + $0x42] sm:$0xff] }
 0x299   :  { %1291 = vrot.lane.b32.xlu2 %v3415_v24, %s2336_s19  ;;  %v3474_v19 = vld [vmem:[#allocation4 + $0xe1] sm:$0xff]  ;;  %v3497_v62 = vld [vmem:[#allocation4 + $0xb0] sm:$0xff]  ;;  %1233 = vst.msk [vmem:[#allocation3 + $0x10] sm:$0xff] %vm982_vm11, %v3505_v12 }
 0x29a   :  { %1289 = vrot.lane.b32.xlu1 %v3421_v20, %s2336_s19  ;;  %v3480_v23 = vld [vmem:[#allocation4 + $0x101] sm:$0xff]  ;;  %1240 = vst.msk [vmem:[#allocation3 + $0x48] sm:$0xff] %vm982_vm11, %v3497_v62  ;;  %v3525_v5 = vld [vmem:[#allocation4 + $0x12] sm:$0xff] }
 0x29b   :  { %1287 = vrot.lane.b32.xlu0 %v3427_v46, %s2336_s19  ;;  %v3488_v53 = vld [vmem:[#allocation4 + $0xc1] sm:$0xff]  ;;  %1232 = vst.msk [vmem:[#allocation3 + $0x8] sm:$0xff] %vm982_vm11, %v3509_v21  ;;  %v3537_v60 = vld [vmem:[#allocation4 + $0xd0] sm:$0xff] }
 0x29c   :  { %v3501_v9 = vld [vmem:[#allocation4 + $0xe0] sm:$0xff]  ;;  %v3511_v26 = vld [vmem:[#allocation4 + $0x110] sm:$0xff]  ;;  %1236 = vst.msk [vmem:[#allocation3 + $0x28] sm:$0xff] %vm982_vm11, %v3519_v43 }
 0x29d   :  { %1243 = vst.msk [vmem:[#allocation3 + $0x60] sm:$0xff] %vm982_vm11, %v3501_v9  ;;  %v3515_v41 = vld [vmem:[#allocation4 + $0x111] sm:$0xff]  ;;  %v3546_v22 = vld [vmem:[#allocation4 + $0x100] sm:$0xff] }
 0x29e   :  { %v3533_v37 = vld [vmem:[#allocation4 + $0xf1] sm:$0xff]  ;;  %1246 = vst.msk [vmem:[#allocation3 + $0x78] sm:$0xff] %vm982_vm11, %v3511_v26  ;;  %v3552_v32 = vld [vmem:[#allocation4 + $0xc0] sm:$0xff]  ;;  %v1280_v3 = vpop.permute.xlu2 %1279 }
 0x29f   :  { %v3544_v38 = vld [vmem:[#allocation4 + $0x70] sm:$0xff]  ;;  %1235 = vst.msk [vmem:[#allocation3 + $0x20] sm:$0xff] %vm982_vm11, %v3529_v63  ;;  %v1456_v52 = vld [vmem:[#allocation4 + $0x120] sm:$0xff] }
 0x2a0   :  { %1242 = vst.msk [vmem:[#allocation3 + $0x58] sm:$0xff] %vm982_vm11, %v3537_v60  ;;  %v3554_v30 = vld [vmem:[#allocation4 + $0xf0] sm:$0xff]  ;;  %v1358_v4 = vld [vmem:[#allocation4 + $0x102] sm:$0xff] }
 0x2a1   :  { %1297 = vrot.lane.b32.xlu2 %v3443_v6, %s2336_s19  ;;  %1238 = vst.msk [vmem:[#allocation3 + $0x38] sm:$0xff] %vm982_vm11, %v3544_v38  ;;  %v1359_v49 = vld [vmem:[#allocation4 + $0x112] sm:$0xff]  ;;  %v3607_v57 = vld [vmem:[#allocation4 + $0xe2] sm:$0xff] }
 0x2a2   :  { %1301 = vrot.lane.b32.xlu1 %v3449_v61, %s2336_s19  ;;  %1245 = vst.msk [vmem:[#allocation3 + $0x70] sm:$0xff] %vm982_vm11, %v3546_v22  ;;  %v3576_v39 = vld [vmem:[#allocation4 + $0x32] sm:$0xff]  ;;  %v3642_v10 = vld [vmem:[#allocation4 + $0xc2] sm:$0xff] }
 0x2a3   :  { %1293 = vrot.lane.b32.xlu0 %v3457_v0, %s2336_s19  ;;  %1241 = vst.msk [vmem:[#allocation3 + $0x50] sm:$0xff] %vm982_vm11, %v3552_v32  ;;  %v3591_v56 = vld [vmem:[#allocation4 + $0xf2] sm:$0xff] }
 0x2a4   :  { %1244 = vst.msk [vmem:[#allocation3 + $0x68] sm:$0xff] %vm982_vm11, %v3554_v30  ;;  %v3634_v7 = vld [vmem:[#allocation4 + $0xd2] sm:$0xff] }
 0x2a5   :  { %1206 = vst.msk [vmem:[#allocation4 + $0x81] sm:$0xff] %vm982_vm11, %v1138_v42 }
 0x2a6   :  { %1231 = vst.msk [vmem:[#allocation3] sm:$0xff] %vm982_vm11, %v1215_v51 }
 0x2a7   :  { %1328 = vst.msk [vmem:[#allocation3] sm:$0xff] %vm1327_vm1, %v1280_v3 }
 0x2a8   :  { %1239 = vst.msk [vmem:[#allocation3 + $0x40] sm:$0xff] %vm982_vm11, %v1223_v13 }
 0x2a9   :  { %1303 = vrot.lane.b32.xlu2 %v3474_v19, %s2336_s19 }
 0x2aa   :  { %1307 = vrot.lane.b32.xlu1 %v3480_v23, %s2336_s19 }
 0x2ab   :  { %1299 = vrot.lane.b32.xlu0 %v3488_v53, %s2336_s19 }
 0x2ac   :  { %v1296_v40 = vpop.permute.xlu1 %1295 }
 0x2ad   :  { %1336 = vst.msk [vmem:[#allocation3 + $0x40] sm:$0xff] %vm1327_vm1, %v1296_v40 }
 0x2b1   :  { %1309 = vrot.lane.b32.xlu2 %v3515_v41, %s2336_s19 }
 0x2b2   :  { %1378 = vrot.lane.b32.xlu1 %v3525_v5, %s2338_s16 }
 0x2b3   :  { %1305 = vrot.lane.b32.xlu0 %v3533_v37, %s2336_s19  ;;  %s2346_s19 = smov 64  }
 0x2b9   :  { %1380 = vrot.lane.b32.xlu2 %v3560_v27, %s2338_s16 }
 0x2ba   :  { %1384 = vrot.lane.b32.xlu1 %v3566_v45, %s2338_s16 }
 0x2bb   :  { %1376 = vrot.lane.b32.xlu0 %v1344_v44, %s2338_s16 }
 0x2c1   :  { %1406 = vrot.lane.b32.xlu2 %v1359_v49, %s2338_s16 }
 0x2c2   :  { %1600 = vrot.lane.b32.xlu1 %v1553_v50, %s2342_s22 }
 0x2c3   :  { %1382 = vrot.lane.b32.xlu0 %v3576_v39, %s2338_s16 }
 0x2c9   :  { %1697 = vrot.lane.b32.xlu2 %v1650_v25, %s2344_s3 }
 0x2ca   :  { %1795 = vrot.lane.b32.xlu1 %v1748_v15, %s2345_s4 }
 0x2cb   :  { %1503 = vrot.lane.b32.xlu0 %v1456_v52, %s2341_s21 }
 0x2d1   :  { %1501 = vrot.lane.b32.xlu2 %v3511_v26, %s2341_s21 }
 0x2d2   :  { %1598 = vrot.lane.b32.xlu1 %v3515_v41, %s2342_s22 }
 0x2d3   :  { %1404 = vrot.lane.b32.xlu0 %v1358_v4, %s2338_s16 }
 0x2d9   :  { %1989 = vrot.lane.b32.xlu2 %v1942_v55, %s2346_s19 }
 0x2da   :  { %1402 = vrot.lane.b32.xlu1 %v3591_v56, %s2338_s16 }
 0x2db   :  { %1892 = vrot.lane.b32.xlu0 %v1845_v18, %s2347_s17 }
 0x2e1   :  { %1793 = vrot.lane.b32.xlu2 %v1456_v52, %s2345_s4 }
 0x2e2   :  { %1890 = vrot.lane.b32.xlu1 %v1553_v50, %s2347_s17 }
 0x2e3   :  { %1695 = vrot.lane.b32.xlu0 %v1359_v49, %s2344_s3 }
 0x2e9   :  { %1596 = vrot.lane.b32.xlu2 %v3480_v23, %s2342_s22 }
 0x2ea   :  { %1693 = vrot.lane.b32.xlu1 %v1358_v4, %s2344_s3 }
 0x2eb   :  { %1499 = vrot.lane.b32.xlu0 %v3546_v22, %s2341_s21  ;;  %v1286_v11 = vpop.permute.xlu2 %1285 }
 0x2ec   :  { %1331 = vst.msk [vmem:[#allocation3 + $0x18] sm:$0xff] %vm1327_vm1, %v1286_v11 }
 0x2f1   :  { %1400 = vrot.lane.b32.xlu2 %v3607_v57, %s2338_s16 }
 0x2f2   :  { %1497 = vrot.lane.b32.xlu1 %v3554_v30, %s2341_s21 }
 0x2f3   :  { %1987 = vrot.lane.b32.xlu0 %v1650_v25, %s2346_s19  ;;  %v1292_v58 = vpop.permute.xlu2 %1291 }
 0x2f4   :  { %1334 = vst.msk [vmem:[#allocation3 + $0x30] sm:$0xff] %vm1327_vm1, %v1292_v58 }
 0x2f9   :  { %1888 = vrot.lane.b32.xlu2 %v3515_v41, %s2347_s17 }
 0x2fa   :  { %1985 = vrot.lane.b32.xlu1 %v1359_v49, %s2346_s19 }
 0x2fb   :  { %1791 = vrot.lane.b32.xlu0 %v3511_v26, %s2345_s4  ;;  %v1298_v28 = vpop.permute.xlu2 %1297 }
 0x2fc   :  { %1337 = vst.msk [vmem:[#allocation3 + $0x48] sm:$0xff] %vm1327_vm1, %v1298_v28 }
 0x301   :  { %1691 = vrot.lane.b32.xlu2 %v3591_v56, %s2344_s3 }
 0x302   :  { %1789 = vrot.lane.b32.xlu1 %v3546_v22, %s2345_s4 }
 0x303   :  { %1594 = vrot.lane.b32.xlu0 %v3533_v37, %s2342_s22  ;;  %v1304_v47 = vpop.permute.xlu2 %1303 }
 0x304   :  { %1340 = vst.msk [vmem:[#allocation3 + $0x60] sm:$0xff] %vm1327_vm1, %v1304_v47  ;;  %v1284_v2 = vpop.permute.xlu1 %1283 }
 0x305   :  { %1330 = vst.msk [vmem:[#allocation3 + $0x10] sm:$0xff] %vm1327_vm1, %v1284_v2  ;;  %v1282_v54 = vpop.permute.xlu0 %1281  ;;  %v1837_v2 = vld [vmem:[#allocation4 + $0x91] sm:$0xff] }
 0x306   :  { %1329 = vst.msk [vmem:[#allocation3 + $0x8] sm:$0xff] %vm1327_vm1, %v1282_v54  ;;  %v1934_v54 = vld [vmem:[#allocation4 + $0x92] sm:$0xff] }
 0x309   :  { %1495 = vrot.lane.b32.xlu2 %v3501_v9, %s2341_s21 }
 0x30a   :  { %1592 = vrot.lane.b32.xlu1 %v3474_v19, %s2342_s22 }
 0x30b   :  { %1398 = vrot.lane.b32.xlu0 %v3634_v7, %s2338_s16  ;;  %v1310_v48 = vpop.permute.xlu2 %1309 }
 0x30c   :  { %1343 = vst.msk [vmem:[#allocation3 + $0x78] sm:$0xff] %vm1327_vm1, %v1310_v48  ;;  %v1290_v31 = vpop.permute.xlu1 %1289 }
 0x30d   :  { %1333 = vst.msk [vmem:[#allocation3 + $0x28] sm:$0xff] %vm1327_vm1, %v1290_v31  ;;  %v1288_v36 = vpop.permute.xlu0 %1287 }
 0x30e   :  { %1332 = vst.msk [vmem:[#allocation3 + $0x20] sm:$0xff] %vm1327_vm1, %v1288_v36 }
 0x311   :  { %1983 = vrot.lane.b32.xlu2 %v1358_v4, %s2346_s19 }
 0x312   :  { %1396 = vrot.lane.b32.xlu1 %v3642_v10, %s2338_s16 }
 0x313   :  { %1886 = vrot.lane.b32.xlu0 %v3480_v23, %s2347_s17  ;;  %v1381_v35 = vpop.permute.xlu2 %1380 }
 0x314   :  { %1427 = vst.msk [vmem:[#allocation3 + $0x10] sm:$0xff] %vm1424_vm2, %v1381_v35  ;;  %v1302_v59 = vpop.permute.xlu1 %1301 }
 0x315   :  { %1339 = vst.msk [vmem:[#allocation3 + $0x58] sm:$0xff] %vm1327_vm1, %v1302_v59  ;;  %v1294_v34 = vpop.permute.xlu0 %1293 }
 0x316   :  { %1335 = vst.msk [vmem:[#allocation3 + $0x38] sm:$0xff] %vm1327_vm1, %v1294_v34 }
 0x319   :  { %1787 = vrot.lane.b32.xlu2 %v3554_v30, %s2345_s4 }
 0x31a   :  { %1884 = vrot.lane.b32.xlu1 %v3533_v37, %s2347_s17  ;;  %v1353_v37 = vld [vmem:[#allocation4 + $0xb2] sm:$0xff] }
 0x31b   :  { %1689 = vrot.lane.b32.xlu0 %v3607_v57, %s2344_s3  ;;  %v1407_v1 = vpop.permute.xlu2 %1406 }
 0x31c   :  { %1440 = vst.msk [vmem:[#allocation3 + $0x78] sm:$0xff] %vm1424_vm2, %v1407_v1  ;;  %v1308_v14 = vpop.permute.xlu1 %1307 }
 0x31d   :  { %1342 = vst.msk [vmem:[#allocation3 + $0x70] sm:$0xff] %vm1327_vm1, %v1308_v14  ;;  %v1300_v23 = vpop.permute.xlu0 %1299  ;;  %v3757_v14 = vld [vmem:[#allocation4 + $0x52] sm:$0xff] }
 0x31e   :  { %1338 = vst.msk [vmem:[#allocation3 + $0x50] sm:$0xff] %vm1327_vm1, %v1300_v23 }
 0x321   :  { %1590 = vrot.lane.b32.xlu2 %v3449_v61, %s2342_s22 }
 0x322   :  { %1687 = vrot.lane.b32.xlu1 %v3634_v7, %s2344_s3 }
 0x323   :  { %1493 = vrot.lane.b32.xlu0 %v3537_v60, %s2341_s21  ;;  %v1698_v26 = vpop.permute.xlu2 %1697 }
 0x324   :  { %v1379_v41 = vpop.permute.xlu1 %1378 }
 0x325   :  { %1426 = vst.msk [vmem:[#allocation3 + $0x8] sm:$0xff] %vm1424_vm2, %v1379_v41  ;;  %v1306_v29 = vpop.permute.xlu0 %1305 }
 0x326   :  { %1341 = vst.msk [vmem:[#allocation3 + $0x68] sm:$0xff] %vm1327_vm1, %v1306_v29 }
 0x329   :  { %1394 = vrot.lane.b32.xlu2 %v1353_v37, %s2338_s16 }
 0x32a   :  { %1491 = vrot.lane.b32.xlu1 %v3552_v32, %s2341_s21 }
 0x32b   :  { %1981 = vrot.lane.b32.xlu0 %v3591_v56, %s2346_s19  ;;  %v1502_v16 = vpop.permute.xlu2 %1501  ;;  %v1545_v56 = vld [vmem:[#allocation4 + $0x81] sm:$0xff] }
 0x32c   :  { %v1385_v22 = vpop.permute.xlu1 %1384 }
 0x32d   :  { %1429 = vst.msk [vmem:[#allocation3 + $0x20] sm:$0xff] %vm1424_vm2, %v1385_v22  ;;  %v1377_v30 = vpop.permute.xlu0 %1376 }
 0x32e   :  { %1425 = vst.msk [vmem:[#allocation3] sm:$0xff] %vm1424_vm2, %v1377_v30 }
 0x331   :  { %1882 = vrot.lane.b32.xlu2 %v3474_v19, %s2347_s17 }
 0x332   :  { %1979 = vrot.lane.b32.xlu1 %v3607_v57, %s2346_s19  ;;  %v3727_v57 = vld [vmem:[#allocation4 + $0x62] sm:$0xff] }
 0x333   :  { %1785 = vrot.lane.b32.xlu0 %v3501_v9, %s2345_s4  ;;  %v1990_v42 = vpop.permute.xlu2 %1989  ;;  %v1352_v9 = vld [vmem:[#allocation4 + $0xa2] sm:$0xff] }
 0x334   :  { %v1601_v44 = vpop.permute.xlu1 %1600 }
 0x335   :  { %v1383_v49 = vpop.permute.xlu0 %1382 }
 0x336   :  { %1428 = vst.msk [vmem:[#allocation3 + $0x18] sm:$0xff] %vm1424_vm2, %v1383_v49 }
 0x339   :  { %1685 = vrot.lane.b32.xlu2 %v3642_v10, %s2344_s3 }
 0x33a   :  { %1783 = vrot.lane.b32.xlu1 %v3537_v60, %s2345_s4 }
 0x33b   :  { %1588 = vrot.lane.b32.xlu0 %v3488_v53, %s2342_s22  ;;  %v1794_v19 = vpop.permute.xlu2 %1793 }
 0x33c   :  { %v1796_v50 = vpop.permute.xlu1 %1795 }
 0x33d   :  { %v1504_v51 = vpop.permute.xlu0 %1503 }
 0x33e   :  { %1537 = vst.msk [vmem:[#allocation3 + $0x78] sm:$0xff] %vm1521_vm3, %v1504_v51 }
 0x33f   :  { %1634 = vst.msk [vmem:[#allocation3 + $0x78] sm:$0xff] %vm1618_vm4, %v1601_v44 }
 0x340   :  { %1731 = vst.msk [vmem:[#allocation3 + $0x78] sm:$0xff] %vm1715_vm5, %v1698_v26 }
 0x341   :  { %1489 = vrot.lane.b32.xlu2 %v3497_v62, %s2341_s21  ;;  %1829 = vst.msk [vmem:[#allocation3 + $0x78] sm:$0xff] %vm1813_vm6, %v1796_v50  ;;  %v3702_v62 = vld [vmem:[#allocation4 + $0x72] sm:$0xff] }
 0x342   :  { %1586 = vrot.lane.b32.xlu1 %v3443_v6, %s2342_s22 }
 0x343   :  { %1392 = vrot.lane.b32.xlu0 %v1352_v9, %s2338_s16  ;;  %v1597_v60 = vpop.permute.xlu2 %1596 }
 0x344   :  { %v1599_v3 = vpop.permute.xlu1 %1598 }
 0x345   :  { %v1405_v15 = vpop.permute.xlu0 %1404 }
 0x346   :  { %1439 = vst.msk [vmem:[#allocation3 + $0x70] sm:$0xff] %vm1424_vm2, %v1405_v15 }
 0x347   :  { %1536 = vst.msk [vmem:[#allocation3 + $0x70] sm:$0xff] %vm1521_vm3, %v1502_v16 }
 0x348   :  { %1633 = vst.msk [vmem:[#allocation3 + $0x70] sm:$0xff] %vm1618_vm4, %v1599_v3 }
 0x349   :  { %1977 = vrot.lane.b32.xlu2 %v3634_v7, %s2346_s19  ;;  %v1740_v7 = vld [vmem:[#allocation4 + $0x90] sm:$0xff] }
 0x34a   :  { %1390 = vrot.lane.b32.xlu1 %v3702_v62, %s2338_s16 }
 0x34b   :  { %1880 = vrot.lane.b32.xlu0 %v3449_v61, %s2347_s17  ;;  %v1401_v6 = vpop.permute.xlu2 %1400 }
 0x34c   :  { %1437 = vst.msk [vmem:[#allocation3 + $0x60] sm:$0xff] %vm1424_vm2, %v1401_v6  ;;  %v1403_v25 = vpop.permute.xlu1 %1402 }
 0x34d   :  { %1438 = vst.msk [vmem:[#allocation3 + $0x68] sm:$0xff] %vm1424_vm2, %v1403_v25  ;;  %v1893_v52 = vpop.permute.xlu0 %1892 }
 0x34e   :  { %1926 = vst.msk [vmem:[#allocation3 + $0x78] sm:$0xff] %vm1910_vm7, %v1893_v52  ;;  %v1539_v52 = vld [vmem:[#allocation4 + $0x21] sm:$0xff] }
 0x34f   :  { %2023 = vst.msk [vmem:[#allocation3 + $0x78] sm:$0xff] %vm2007_vm8, %v1990_v42 }
 0x351   :  { %1781 = vrot.lane.b32.xlu2 %v3552_v32, %s2345_s4  ;;  %v1642_v32 = vld [vmem:[#allocation4 + $0x82] sm:$0xff] }
 0x352   :  { %1878 = vrot.lane.b32.xlu1 %v3488_v53, %s2347_s17  ;;  %v1448_v53 = vld [vmem:[#allocation4 + $0x80] sm:$0xff] }
 0x353   :  { %1683 = vrot.lane.b32.xlu0 %v1353_v37, %s2344_s3  ;;  %v1889_v61 = vpop.permute.xlu2 %1888 }
 0x354   :  { %v1891_v4 = vpop.permute.xlu1 %1890 }
 0x355   :  { %v1696_v55 = vpop.permute.xlu0 %1695 }
 0x356   :  { %1730 = vst.msk [vmem:[#allocation3 + $0x70] sm:$0xff] %vm1715_vm5, %v1696_v55  ;;  %v2040_v18 = vld [vmem:[#allocation3 + $0x78] sm:$0xff] }
 0x357   :  { %1828 = vst.msk [vmem:[#allocation3 + $0x70] sm:$0xff] %vm1813_vm6, %v1794_v19  ;;  %2289 = vmatpush.xpose.msk.msra.mxu1 %vm2041_vm9, %v2040_v18 }
 0x358   :  { %1925 = vst.msk [vmem:[#allocation3 + $0x70] sm:$0xff] %vm1910_vm7, %v1891_v4 }
 0x359   :  { %1584 = vrot.lane.b32.xlu2 %v1545_v56, %s2342_s22 }
 0x35a   :  { %1681 = vrot.lane.b32.xlu1 %v1642_v32, %s2344_s3 }
 0x35b   :  { %1487 = vrot.lane.b32.xlu0 %v1448_v53, %s2341_s21  ;;  %v1692_v13 = vpop.permute.xlu2 %1691 }
 0x35c   :  { %v1694_v40 = vpop.permute.xlu1 %1693 }
 0x35d   :  { %v1500_v11 = vpop.permute.xlu0 %1499 }
 0x35e   :  { %1535 = vst.msk [vmem:[#allocation3 + $0x68] sm:$0xff] %vm1521_vm3, %v1500_v11 }
 0x35f   :  { %1632 = vst.msk [vmem:[#allocation3 + $0x68] sm:$0xff] %vm1618_vm4, %v1597_v60 }
 0x360   :  { %1729 = vst.msk [vmem:[#allocation3 + $0x68] sm:$0xff] %vm1715_vm5, %v1694_v40 }
 0x361   :  { %1388 = vrot.lane.b32.xlu2 %v3727_v57, %s2338_s16 }
 0x362   :  { %1485 = vrot.lane.b32.xlu1 %v3544_v38, %s2341_s21 }
 0x363   :  { %1975 = vrot.lane.b32.xlu0 %v3642_v10, %s2346_s19  ;;  %v1496_v58 = vpop.permute.xlu2 %1495 }
 0x364   :  { %v1498_v28 = vpop.permute.xlu1 %1497 }
 0x365   :  { %1534 = vst.msk [vmem:[#allocation3 + $0x60] sm:$0xff] %vm1521_vm3, %v1498_v28  ;;  %v1988_v47 = vpop.permute.xlu0 %1987 }
 0x366   :  { %2022 = vst.msk [vmem:[#allocation3 + $0x70] sm:$0xff] %vm2007_vm8, %v1988_v47 }
 0x369   :  { %1876 = vrot.lane.b32.xlu2 %v1837_v2, %s2347_s17 }
 0x36a   :  { %1973 = vrot.lane.b32.xlu1 %v1934_v54, %s2346_s19 }
 0x36b   :  { %1779 = vrot.lane.b32.xlu0 %v1740_v7, %s2345_s4  ;;  %v1984_v48 = vpop.permute.xlu2 %1983 }
 0x36c   :  { %v1986_v31 = vpop.permute.xlu1 %1985 }
 0x36d   :  { %v1792_v36 = vpop.permute.xlu0 %1791  ;;  %v2039_v10 = vld [vmem:[#allocation3 + $0x70] sm:$0xff] }
 0x36e   :  { %1827 = vst.msk [vmem:[#allocation3 + $0x68] sm:$0xff] %vm1813_vm6, %v1792_v36  ;;  %2290 = vmatpush.xpose.msk.msra.mxu1 %vm2041_vm9, %v2039_v10 }
 0x36f   :  { %1924 = vst.msk [vmem:[#allocation3 + $0x68] sm:$0xff] %vm1910_vm7, %v1889_v61 }
 0x370   :  { %2021 = vst.msk [vmem:[#allocation3 + $0x68] sm:$0xff] %vm2007_vm8, %v1986_v31 }
 0x371   :  { %1679 = vrot.lane.b32.xlu2 %v3702_v62, %s2344_s3 }
 0x372   :  { %1777 = vrot.lane.b32.xlu1 %v1448_v53, %s2345_s4 }
 0x373   :  { %1582 = vrot.lane.b32.xlu0 %v3457_v0, %s2342_s22  ;;  %v1788_v35 = vpop.permute.xlu2 %1787 }
 0x374   :  { %v1790_v59 = vpop.permute.xlu1 %1789 }
 0x375   :  { %v1595_v34 = vpop.permute.xlu0 %1594 }
 0x376   :  { %1631 = vst.msk [vmem:[#allocation3 + $0x60] sm:$0xff] %vm1618_vm4, %v1595_v34 }
 0x377   :  { %1728 = vst.msk [vmem:[#allocation3 + $0x60] sm:$0xff] %vm1715_vm5, %v1692_v13  ;;  %v2038_v1 = vld [vmem:[#allocation3 + $0x68] sm:$0xff] }
 0x378   :  { %1826 = vst.msk [vmem:[#allocation3 + $0x60] sm:$0xff] %vm1813_vm6, %v1790_v59  ;;  %2291 = vmatpush.xpose.msk.msra.mxu1 %vm2041_vm9, %v2038_v1 }
 0x379   :  { %1483 = vrot.lane.b32.xlu2 %v3492_v33, %s2341_s21 }
 0x37a   :  { %1580 = vrot.lane.b32.xlu1 %v3415_v24, %s2342_s22 }
 0x37b   :  { %1386 = vrot.lane.b32.xlu0 %v3757_v14, %s2338_s16  ;;  %v1591_v23 = vpop.permute.xlu2 %1590 }
 0x37c   :  { %v1593_v26 = vpop.permute.xlu1 %1592 }
 0x37d   :  { %v1399_v41 = vpop.permute.xlu0 %1398 }
 0x37e   :  { %1436 = vst.msk [vmem:[#allocation3 + $0x58] sm:$0xff] %vm1424_vm2, %v1399_v41 }
 0x37f   :  { %1533 = vst.msk [vmem:[#allocation3 + $0x58] sm:$0xff] %vm1521_vm3, %v1496_v58 }
 0x380   :  { %1630 = vst.msk [vmem:[#allocation3 + $0x58] sm:$0xff] %vm1618_vm4, %v1593_v26 }
 0x381   :  { %1971 = vrot.lane.b32.xlu2 %v1642_v32, %s2346_s19 }
 0x382   :  { %1775 = vrot.lane.b32.xlu1 %v3544_v38, %s2345_s4 }
 0x383   :  { %1874 = vrot.lane.b32.xlu0 %v1545_v56, %s2347_s17  ;;  %v1395_v29 = vpop.permute.xlu2 %1394 }
 0x384   :  { %1434 = vst.msk [vmem:[#allocation3 + $0x48] sm:$0xff] %vm1424_vm2, %v1395_v29  ;;  %v1397_v37 = vpop.permute.xlu1 %1396 }
 0x385   :  { %1435 = vst.msk [vmem:[#allocation3 + $0x50] sm:$0xff] %vm1424_vm2, %v1397_v37  ;;  %v1887_v16 = vpop.permute.xlu0 %1886 }
 0x386   :  { %1923 = vst.msk [vmem:[#allocation3 + $0x60] sm:$0xff] %vm1910_vm7, %v1887_v16 }
 0x387   :  { %2020 = vst.msk [vmem:[#allocation3 + $0x60] sm:$0xff] %vm2007_vm8, %v1984_v48 }
 0x389   :  { %1481 = vrot.lane.b32.xlu2 %v3519_v43, %s2341_s21 }
 0x38a   :  { %1578 = vrot.lane.b32.xlu1 %v3421_v20, %s2342_s22 }
 0x38b   :  { %1677 = vrot.lane.b32.xlu0 %v3727_v57, %s2344_s3  ;;  %v1883_v38 = vpop.permute.xlu2 %1882 }
 0x38c   :  { %v1885_v22 = vpop.permute.xlu1 %1884 }
 0x38d   :  { %v1690_v30 = vpop.permute.xlu0 %1689 }
 0x38e   :  { %1727 = vst.msk [vmem:[#allocation3 + $0x58] sm:$0xff] %vm1715_vm5, %v1690_v30  ;;  %v2037_v42 = vld [vmem:[#allocation3 + $0x60] sm:$0xff] }
 0x38f   :  { %1825 = vst.msk [vmem:[#allocation3 + $0x58] sm:$0xff] %vm1813_vm6, %v1788_v35  ;;  %2292 = vmatpush.xpose.msk.msra.mxu1 %vm2041_vm9, %v2037_v42 }
 0x390   :  { %1922 = vst.msk [vmem:[#allocation3 + $0x58] sm:$0xff] %vm1910_vm7, %v1885_v22 }
 0x391   :  { %1969 = vrot.lane.b32.xlu2 %v3702_v62, %s2346_s19 }
 0x392   :  { %1773 = vrot.lane.b32.xlu1 %v3492_v33, %s2345_s4 }
 0x393   :  { %1872 = vrot.lane.b32.xlu0 %v3457_v0, %s2347_s17  ;;  %v1686_v44 = vpop.permute.xlu2 %1685 }
 0x394   :  { %v1688_v49 = vpop.permute.xlu1 %1687 }
 0x395   :  { %v1494_v19 = vpop.permute.xlu0 %1493 }
 0x396   :  { %1532 = vst.msk [vmem:[#allocation3 + $0x50] sm:$0xff] %vm1521_vm3, %v1494_v19 }
 0x397   :  { %1629 = vst.msk [vmem:[#allocation3 + $0x50] sm:$0xff] %vm1618_vm4, %v1591_v23 }
 0x398   :  { %1726 = vst.msk [vmem:[#allocation3 + $0x50] sm:$0xff] %vm1715_vm5, %v1688_v49 }
 0x399   :  { %1479 = vrot.lane.b32.xlu2 %v3529_v63, %s2341_s21 }
 0x39a   :  { %1576 = vrot.lane.b32.xlu1 %v3427_v46, %s2342_s22 }
 0x39b   :  { %1675 = vrot.lane.b32.xlu0 %v3757_v14, %s2344_s3  ;;  %v1490_v33 = vpop.permute.xlu2 %1489 }
 0x39c   :  { %v1492_v0 = vpop.permute.xlu1 %1491 }
 0x39d   :  { %1531 = vst.msk [vmem:[#allocation3 + $0x48] sm:$0xff] %vm1521_vm3, %v1492_v0  ;;  %v1982_v50 = vpop.permute.xlu0 %1981 }
 0x39e   :  { %2019 = vst.msk [vmem:[#allocation3 + $0x58] sm:$0xff] %vm2007_vm8, %v1982_v50 }
 0x3a1   :  { %1967 = vrot.lane.b32.xlu2 %v3727_v57, %s2346_s19 }
 0x3a2   :  { %1771 = vrot.lane.b32.xlu1 %v3519_v43, %s2345_s4 }
 0x3a3   :  { %1870 = vrot.lane.b32.xlu0 %v3415_v24, %s2347_s17  ;;  %v1978_v51 = vpop.permute.xlu2 %1977 }
 0x3a4   :  { %v1980_v9 = vpop.permute.xlu1 %1979 }
 0x3a5   :  { %v1786_v60 = vpop.permute.xlu0 %1785  ;;  %v2036_v3 = vld [vmem:[#allocation3 + $0x58] sm:$0xff] }
 0x3a6   :  { %1824 = vst.msk [vmem:[#allocation3 + $0x50] sm:$0xff] %vm1813_vm6, %v1786_v60  ;;  %2293 = vmatpush.xpose.msk.msra.mxu1 %vm2041_vm9, %v2036_v3 }
 0x3a7   :  { %1921 = vst.msk [vmem:[#allocation3 + $0x50] sm:$0xff] %vm1910_vm7, %v1883_v38 }
 0x3a8   :  { %2018 = vst.msk [vmem:[#allocation3 + $0x50] sm:$0xff] %vm2007_vm8, %v1980_v9 }
 0x3a9   :  { %1477 = vrot.lane.b32.xlu2 %v3484_v8, %s2341_s21 }
 0x3aa   :  { %1574 = vrot.lane.b32.xlu1 %v3399_v17, %s2342_s22 }
 0x3ab   :  { %1673 = vrot.lane.b32.xlu0 %v3566_v45, %s2344_s3  ;;  %v1782_v24 = vpop.permute.xlu2 %1781 }
 0x3ac   :  { %v1784_v43 = vpop.permute.xlu1 %1783 }
 0x3ad   :  { %v1589_v15 = vpop.permute.xlu0 %1588 }
 0x3ae   :  { %1628 = vst.msk [vmem:[#allocation3 + $0x48] sm:$0xff] %vm1618_vm4, %v1589_v15 }
 0x3af   :  { %1725 = vst.msk [vmem:[#allocation3 + $0x48] sm:$0xff] %vm1715_vm5, %v1686_v44  ;;  %v2035_v62 = vld [vmem:[#allocation3 + $0x50] sm:$0xff] }
 0x3b0   :  { %1823 = vst.msk [vmem:[#allocation3 + $0x48] sm:$0xff] %vm1813_vm6, %v1784_v43  ;;  %2294 = vmatpush.xpose.msk.msra.mxu1 %vm2041_vm9, %v2035_v62 }
 0x3b1   :  { %1965 = vrot.lane.b32.xlu2 %v3757_v14, %s2346_s19 }
 0x3b2   :  { %1769 = vrot.lane.b32.xlu1 %v3529_v63, %s2345_s4 }
 0x3b3   :  { %1868 = vrot.lane.b32.xlu0 %v3421_v20, %s2347_s17  ;;  %v1585_v17 = vpop.permute.xlu2 %1584 }
 0x3b4   :  { %v1587_v6 = vpop.permute.xlu1 %1586 }
 0x3b5   :  { %v1393_v25 = vpop.permute.xlu0 %1392 }
 0x3b6   :  { %1433 = vst.msk [vmem:[#allocation3 + $0x40] sm:$0xff] %vm1424_vm2, %v1393_v25 }
 0x3b7   :  { %1530 = vst.msk [vmem:[#allocation3 + $0x40] sm:$0xff] %vm1521_vm3, %v1490_v33 }
 0x3b8   :  { %1627 = vst.msk [vmem:[#allocation3 + $0x40] sm:$0xff] %vm1618_vm4, %v1587_v6 }
 0x3b9   :  { %1475 = vrot.lane.b32.xlu2 %v3505_v12, %s2341_s21 }
 0x3ba   :  { %1572 = vrot.lane.b32.xlu1 %v1539_v52, %s2342_s22 }
 0x3bb   :  { %1671 = vrot.lane.b32.xlu0 %v3576_v39, %s2344_s3  ;;  %v1389_v63 = vpop.permute.xlu2 %1388 }
 0x3bc   :  { %1431 = vst.msk [vmem:[#allocation3 + $0x30] sm:$0xff] %vm1424_vm2, %v1389_v63  ;;  %v1391_v20 = vpop.permute.xlu1 %1390 }
 0x3bd   :  { %1432 = vst.msk [vmem:[#allocation3 + $0x38] sm:$0xff] %vm1424_vm2, %v1391_v20  ;;  %v1881_v61 = vpop.permute.xlu0 %1880 }
 0x3be   :  { %1920 = vst.msk [vmem:[#allocation3 + $0x48] sm:$0xff] %vm1910_vm7, %v1881_v61  ;;  %v2024_v61 = vld [vmem:[%s3944_s2] sm:$0xff] }
 0x3bf   :  { %2017 = vst.msk [vmem:[#allocation3 + $0x48] sm:$0xff] %vm2007_vm8, %v1978_v51 }
 0x3c1   :  { %1963 = vrot.lane.b32.xlu2 %v3566_v45, %s2346_s19  ;;  %v1538_v45 = vld [vmem:[#allocation4 + $0x11] sm:$0xff] }
 0x3c2   :  { %1767 = vrot.lane.b32.xlu1 %v3484_v8, %s2345_s4 }
 0x3c3   :  { %1866 = vrot.lane.b32.xlu0 %v3427_v46, %s2347_s17  ;;  %v1877_v4 = vpop.permute.xlu2 %1876 }
 0x3c4   :  { %v1879_v55 = vpop.permute.xlu1 %1878 }
 0x3c5   :  { %v1684_v18 = vpop.permute.xlu0 %1683 }
 0x3c6   :  { %1724 = vst.msk [vmem:[#allocation3 + $0x40] sm:$0xff] %vm1715_vm5, %v1684_v18  ;;  %v2034_v56 = vld [vmem:[#allocation3 + $0x48] sm:$0xff]  ;;  %v2348_v18 = vmov 0  }
 0x3c7   :  { %1822 = vst.msk [vmem:[#allocation3 + $0x40] sm:$0xff] %vm1813_vm6, %v1782_v24  ;;  %2295 = vmatpush.xpose.msk.msra.mxu1 %vm2041_vm9, %v2034_v56  ;;  %2330 = vset.pattern.permute.xlu0 %v2348_v18 }
 0x3c8   :  { %1919 = vst.msk [vmem:[#allocation3 + $0x40] sm:$0xff] %vm1910_vm7, %v1879_v55 }
 0x3c9   :  { %1473 = vrot.lane.b32.xlu2 %v3509_v21, %s2341_s21  ;;  %v1831_v21 = vld [vmem:[#allocation4 + $0x31] sm:$0xff] }
 0x3ca   :  { %1570 = vrot.lane.b32.xlu1 %v1538_v45, %s2342_s22 }
 0x3cb   :  { %1669 = vrot.lane.b32.xlu0 %v3560_v27, %s2344_s3  ;;  %v1680_v46 = vpop.permute.xlu2 %1679 }
 0x3cc   :  { %v1682_v8 = vpop.permute.xlu1 %1681 }
 0x3cd   :  { %v1488_v32 = vpop.permute.xlu0 %1487 }
 0x3ce   :  { %1529 = vst.msk [vmem:[#allocation3 + $0x38] sm:$0xff] %vm1521_vm3, %v1488_v32 }
 0x3cf   :  { %1626 = vst.msk [vmem:[#allocation3 + $0x38] sm:$0xff] %vm1618_vm4, %v1585_v17 }
 0x3d0   :  { %1723 = vst.msk [vmem:[#allocation3 + $0x38] sm:$0xff] %vm1715_vm5, %v1682_v8 }
 0x3d1   :  { %1961 = vrot.lane.b32.xlu2 %v3576_v39, %s2346_s19 }
 0x3d2   :  { %1765 = vrot.lane.b32.xlu1 %v3505_v12, %s2345_s4 }
 0x3d3   :  { %1864 = vrot.lane.b32.xlu0 %v1831_v21, %s2347_s17  ;;  %v1484_v53 = vpop.permute.xlu2 %1483 }
 0x3d4   :  { %v1486_v13 = vpop.permute.xlu1 %1485 }
 0x3d5   :  { %1528 = vst.msk [vmem:[#allocation3 + $0x30] sm:$0xff] %vm1521_vm3, %v1486_v13  ;;  %v1976_v40 = vpop.permute.xlu0 %1975 }
 0x3d6   :  { %2016 = vst.msk [vmem:[#allocation3 + $0x40] sm:$0xff] %vm2007_vm8, %v1976_v40 }
 0x3d9   :  { %1862 = vrot.lane.b32.xlu2 %v1539_v52, %s2347_s17 }
 0x3db   :  { %1667 = vrot.lane.b32.xlu0 %v3525_v5, %s2344_s3  ;;  %v1972_v11 = vpop.permute.xlu2 %1971 }
 0x3dc   :  { %v1974_v39 = vpop.permute.xlu1 %1973 }
 0x3dd   :  { %v1780_v57 = vpop.permute.xlu0 %1779  ;;  %v2033_v58 = vld [vmem:[#allocation3 + $0x40] sm:$0xff] }
 0x3de   :  { %1821 = vst.msk [vmem:[#allocation3 + $0x38] sm:$0xff] %vm1813_vm6, %v1780_v57  ;;  %2296 = vmatpush.xpose.msk.msra.mxu1 %vm2041_vm9, %v2033_v58 }
 0x3df   :  { %1918 = vst.msk [vmem:[#allocation3 + $0x38] sm:$0xff] %vm1910_vm7, %v1877_v4 }
 0x3e0   :  { %2015 = vst.msk [vmem:[#allocation3 + $0x38] sm:$0xff] %vm2007_vm8, %v1974_v39 }
 0x3e3   :  { %1959 = vrot.lane.b32.xlu0 %v3560_v27, %s2346_s19  ;;  %v1482_v12 = vpop.permute.xlu2 %1481 }
 0x3e4   :  { %1526 = vst.msk [vmem:[#allocation3 + $0x20] sm:$0xff] %vm1521_vm3, %v1482_v12  ;;  %v1778_v28 = vpop.permute.xlu1 %1777  ;;  %v2122_v12 = vld [vmem:[%s3945_s5] sm:$0xff] }
 0x3e5   :  { %v1583_v5 = vpop.permute.xlu0 %1582 }
 0x3e6   :  { %1625 = vst.msk [vmem:[#allocation3 + $0x30] sm:$0xff] %vm1618_vm4, %v1583_v5 }
 0x3e7   :  { %1722 = vst.msk [vmem:[#allocation3 + $0x30] sm:$0xff] %vm1715_vm5, %v1680_v46  ;;  %v2032_v47 = vld [vmem:[#allocation3 + $0x38] sm:$0xff] }
 0x3e8   :  { %1820 = vst.msk [vmem:[#allocation3 + $0x30] sm:$0xff] %vm1813_vm6, %v1778_v28  ;;  %2297 = vmatpush.xpose.msk.msra.mxu1 %vm2041_vm9, %v2032_v47 }
 0x3eb   :  { %v1970_v2 = vpop.permute.xlu2 %1969 }
 0x3ec   :  { %v1581_v54 = vpop.permute.xlu1 %1580 }
 0x3ed   :  { %v1387_v7 = vpop.permute.xlu0 %1386 }
 0x3ee   :  { %1430 = vst.msk [vmem:[#allocation3 + $0x28] sm:$0xff] %vm1424_vm2, %v1387_v7 }
 0x3ef   :  { %1527 = vst.msk [vmem:[#allocation3 + $0x28] sm:$0xff] %vm1521_vm3, %v1484_v53 }
 0x3f0   :  { %1624 = vst.msk [vmem:[#allocation3 + $0x28] sm:$0xff] %vm1618_vm4, %v1581_v54 }
 0x3f3   :  { %v1480_v27 = vpop.permute.xlu2 %1479 }
 0x3f4   :  { %1525 = vst.msk [vmem:[#allocation3 + $0x18] sm:$0xff] %vm1521_vm3, %v1480_v27  ;;  %v1776_v48 = vpop.permute.xlu1 %1775 }
 0x3f5   :  { %v1875_v31 = vpop.permute.xlu0 %1874 }
 0x3f6   :  { %1917 = vst.msk [vmem:[#allocation3 + $0x30] sm:$0xff] %vm1910_vm7, %v1875_v31 }
 0x3f7   :  { %2014 = vst.msk [vmem:[#allocation3 + $0x30] sm:$0xff] %vm2007_vm8, %v1972_v11 }
 0x3fb   :  { %v1968_v36 = vpop.permute.xlu2 %1967 }
 0x3fc   :  { %v1579_v10 = vpop.permute.xlu1 %1578 }
 0x3fd   :  { %1623 = vst.msk [vmem:[#allocation3 + $0x20] sm:$0xff] %vm1618_vm4, %v1579_v10  ;;  %v1678_v35 = vpop.permute.xlu0 %1677 }
 0x3fe   :  { %1721 = vst.msk [vmem:[#allocation3 + $0x28] sm:$0xff] %vm1715_vm5, %v1678_v35  ;;  %v2031_v59 = vld [vmem:[#allocation3 + $0x30] sm:$0xff] }
 0x3ff   :  { %1819 = vst.msk [vmem:[#allocation3 + $0x28] sm:$0xff] %vm1813_vm6, %v1776_v48  ;;  %2298 = vmatpush.xpose.msk.msra.mxu1 %vm2041_vm9, %v2031_v59  ;;  %v2150_v48 = vld [vmem:[%s3947_s7] sm:$0xf] }
 0x403   :  { %v1478_v34 = vpop.permute.xlu2 %1477 }
 0x404   :  { %1524 = vst.msk [vmem:[#allocation3 + $0x10] sm:$0xff] %vm1521_vm3, %v1478_v34  ;;  %v1774_v1 = vpop.permute.xlu1 %1773 }
 0x405   :  { %v1873_v14 = vpop.permute.xlu0 %1872 }
 0x406   :  { %1916 = vst.msk [vmem:[#allocation3 + $0x28] sm:$0xff] %vm1910_vm7, %v1873_v14 }
 0x407   :  { %2013 = vst.msk [vmem:[#allocation3 + $0x28] sm:$0xff] %vm2007_vm8, %v1970_v2  ;;  %v2135_v2 = vld [vmem:[%s3946_s6] sm:$0xff] }
 0x40b   :  { %v1966_v23 = vpop.permute.xlu2 %1965 }
 0x40c   :  { %v1577_v26 = vpop.permute.xlu1 %1576 }
 0x40d   :  { %1622 = vst.msk [vmem:[#allocation3 + $0x18] sm:$0xff] %vm1618_vm4, %v1577_v26  ;;  %v1676_v41 = vpop.permute.xlu0 %1675 }
 0x40e   :  { %1720 = vst.msk [vmem:[#allocation3 + $0x20] sm:$0xff] %vm1715_vm5, %v1676_v41  ;;  %v2030_v29 = vld [vmem:[#allocation3 + $0x28] sm:$0xff] }
 0x40f   :  { %1818 = vst.msk [vmem:[#allocation3 + $0x20] sm:$0xff] %vm1813_vm6, %v1774_v1  ;;  %2299 = vmatpush.xpose.msk.msra.mxu1 %vm2041_vm9, %v2030_v29 }
 0x413   :  { %v1476_v37 = vpop.permute.xlu2 %1475 }
 0x414   :  { %1523 = vst.msk [vmem:[#allocation3 + $0x8] sm:$0xff] %vm1521_vm3, %v1476_v37  ;;  %v1772_v16 = vpop.permute.xlu1 %1771 }
 0x415   :  { %v1871_v38 = vpop.permute.xlu0 %1870 }
 0x416   :  { %1915 = vst.msk [vmem:[#allocation3 + $0x20] sm:$0xff] %vm1910_vm7, %v1871_v38 }
 0x417   :  { %2012 = vst.msk [vmem:[#allocation3 + $0x20] sm:$0xff] %vm2007_vm8, %v1968_v36 }
 0x41b   :  { %v1964_v22 = vpop.permute.xlu2 %1963 }
 0x41c   :  { %v1575_v30 = vpop.permute.xlu1 %1574 }
 0x41d   :  { %1621 = vst.msk [vmem:[#allocation3 + $0x10] sm:$0xff] %vm1618_vm4, %v1575_v30  ;;  %v1674_v42 = vpop.permute.xlu0 %1673 }
 0x41e   :  { %1719 = vst.msk [vmem:[#allocation3 + $0x18] sm:$0xff] %vm1715_vm5, %v1674_v42  ;;  %v2029_v44 = vld [vmem:[#allocation3 + $0x20] sm:$0xff] }
 0x41f   :  { %1817 = vst.msk [vmem:[#allocation3 + $0x18] sm:$0xff] %vm1813_vm6, %v1772_v16  ;;  %2300 = vmatpush.xpose.msk.msra.mxu1 %vm2041_vm9, %v2029_v44 }
 0x423   :  { %v1474_v49 = vpop.permute.xlu2 %1473 }
 0x424   :  { %1522 = vst.msk [vmem:[#allocation3] sm:$0xff] %vm1521_vm3, %v1474_v49  ;;  %v1770_v19 = vpop.permute.xlu1 %1769 }
 0x425   :  { %v1869_v33 = vpop.permute.xlu0 %1868 }
 0x426   :  { %1914 = vst.msk [vmem:[#allocation3 + $0x18] sm:$0xff] %vm1910_vm7, %v1869_v33 }
 0x427   :  { %2011 = vst.msk [vmem:[#allocation3 + $0x18] sm:$0xff] %vm2007_vm8, %v1966_v23 }
 0x42b   :  { %v1962_v15 = vpop.permute.xlu2 %1961 }
 0x42c   :  { %v1573_v0 = vpop.permute.xlu1 %1572 }
 0x42d   :  { %1620 = vst.msk [vmem:[#allocation3 + $0x8] sm:$0xff] %vm1618_vm4, %v1573_v0  ;;  %v1672_v50 = vpop.permute.xlu0 %1671 }
 0x42e   :  { %1718 = vst.msk [vmem:[#allocation3 + $0x10] sm:$0xff] %vm1715_vm5, %v1672_v50  ;;  %v2028_v51 = vld [vmem:[#allocation3 + $0x18] sm:$0xff] }
 0x42f   :  { %1816 = vst.msk [vmem:[#allocation3 + $0x10] sm:$0xff] %vm1813_vm6, %v1770_v19  ;;  %2301 = vmatpush.xpose.msk.msra.mxu1 %vm2041_vm9, %v2028_v51 }
 0x433   :  { %v1863_v52 = vpop.permute.xlu2 %1862 }
 0x434   :  { %v1768_v9 = vpop.permute.xlu1 %1767 }
 0x435   :  { %v1867_v60 = vpop.permute.xlu0 %1866 }
 0x436   :  { %1913 = vst.msk [vmem:[#allocation3 + $0x10] sm:$0xff] %vm1910_vm7, %v1867_v60 }
 0x437   :  { %2010 = vst.msk [vmem:[#allocation3 + $0x10] sm:$0xff] %vm2007_vm8, %v1964_v22 }
 0x43c   :  { %v1571_v3 = vpop.permute.xlu1 %1570 }
 0x43d   :  { %1619 = vst.msk [vmem:[#allocation3] sm:$0xff] %vm1618_vm4, %v1571_v3  ;;  %v1670_v24 = vpop.permute.xlu0 %1669 }
 0x43e   :  { %1717 = vst.msk [vmem:[#allocation3 + $0x8] sm:$0xff] %vm1715_vm5, %v1670_v24  ;;  %v2027_v43 = vld [vmem:[#allocation3 + $0x10] sm:$0xff] }
 0x43f   :  { %1815 = vst.msk [vmem:[#allocation3 + $0x8] sm:$0xff] %vm1813_vm6, %v1768_v9  ;;  %2302 = vmatpush.xpose.msk.msra.mxu1 %vm2041_vm9, %v2027_v43 }
 0x444   :  { %v1766_v6 = vpop.permute.xlu1 %1765 }
 0x445   :  { %v1865_v62 = vpop.permute.xlu0 %1864 }
 0x446   :  { %1912 = vst.msk [vmem:[#allocation3 + $0x8] sm:$0xff] %vm1910_vm7, %v1865_v62 }
 0x447   :  { %2009 = vst.msk [vmem:[#allocation3 + $0x8] sm:$0xff] %vm2007_vm8, %v1962_v15 }
 0x44d   :  { %v1668_v17 = vpop.permute.xlu0 %1667 }
 0x44e   :  { %1716 = vst.msk [vmem:[#allocation3] sm:$0xff] %vm1715_vm5, %v1668_v17  ;;  %v2026_v25 = vld [vmem:[#allocation3 + $0x8] sm:$0xff] }
 0x44f   :  { %1814 = vst.msk [vmem:[#allocation3] sm:$0xff] %vm1813_vm6, %v1766_v6  ;;  %2303 = vmatpush.xpose.msk.msra.mxu1 %vm2041_vm9, %v2026_v25 }
 0x450   :  { %1911 = vst.msk [vmem:[#allocation3] sm:$0xff] %vm1910_vm7, %v1863_v52 }
 0x455   :  { %v1960_v63 = vpop.permute.xlu0 %1959 }
 0x456   :  { %2008 = vst.msk [vmem:[#allocation3] sm:$0xff] %vm2007_vm8, %v1960_v63 }
 0x45d   :  { %v2025_v20 = vld [vmem:[#allocation3] sm:$0xff] }
 0x45e   :  { %2304 = vmatpush.xpose.msk.msra.mxu1 %vm2041_vm9, %v2025_v20 }
 0x461   :  { %2305 = vmatmul.msk.f32.vlgmr.msra.gmra.mxu1 %vm2041_vm9, %v2024_v61 }
 0x4de   :  { %v2110_v4 = vpop.f32.mrf.mxu1 }
 0x4df   :  { %v2116_v55 = vmul.f32 %v2110_v4, %v2110_v4  ;;  %2113 = vadd.xlane.f32.xlu1 %v2110_v4 }
 0x4e1   :  { %2117 = vadd.xlane.f32.xlu2 %v2116_v55 }
 0x552   :  { %v2114_v56 = vpop.xlane.xlu1 %2113 }
 0x553   :  { %v2115_v45 = vmul.f32 0.0078125, %v2114_v56 }
 0x554   :  { %v2118_v46 = vpop.xlane.xlu2 %2117 }
 0x555   :  { %v2120_v8 = vmul.f32 %v2115_v45, %v2115_v45  ;;  %v2119_v32 = vmul.f32 0.0078125, %v2118_v46 }
 0x557   :  { %v2121_v21 = vsub.f32 %v2119_v32, %v2120_v8 }
 0x559   :  { %v2123_v53 = vadd.f32 1e-05, %v2121_v21 }
 0x55b   :  { %2333 = vrsqrt.f32 %v2123_v53  ;;  %vm2130_vm11 = vweird.f32 %v2123_v53 }
 0x561   :  { %v2334_v13 = vpop.eup %2333 }
 0x562   :  { %v2125_v40 = vmul.f32 %v2334_v13, %v2123_v53  ;;  %vm2131_vm10 = vweird.f32 %v2334_v13 }
 0x563   :  { %vm2132_vm12 = vmor %vm2130_vm11, %vm2131_vm10 }
 0x564   :  { %v2126_v11 = vmul.f32 %v2334_v13, %v2125_v40 }
 0x566   :  { %v2127_v39 = vmul.f32 0.5, %v2126_v11 }
 0x568   :  { %v2128_v57 = vsub.f32 1.5, %v2127_v39 }
 0x56a   :  { %v2129_v58 = vmul.f32 %v2334_v13, %v2128_v57 }
 0x56c   :  { %v2133_v28 = vsel %vm2132_vm12, %v2334_v13, %v2129_v58 }
 0x56d   :  { %v2134_v5 = vmul.f32 %v2133_v28, %v2122_v12 }
 0x56f   :  { %2140 = vperm.xlu0 %2330, %v2134_v5   ;;  %v2136_v47 = vmul.f32 %v2134_v5, %v2115_v45 }
 0x571   :  { %v2137_v54 = vsub.f32 %v2135_v2, %v2136_v47 }
 0x577   :  { %2146 = vperm.xlu0 %2330, %v2137_v54  }
 0x5e1   :  { %v2141_v7 = vpop.permute.xlu0 %2140 }
 0x5e2   :  { %v2143_v27 = vmul.f32 %v2141_v7, %v2110_v4 }
 0x5e9   :  { %v2147_v31 = vpop.permute.xlu0 %2146 }
 0x5ea   :  { %v2149_v36 = vadd.f32 %v2147_v31, %v2143_v27 }
 0x5ec   :  { %v2151_v10 = vadd.f32 %v2150_v48, %v2149_v36  ;;  %v2154_v35 = vmax.f32 %v2149_v36, 0.0 }
 0x5ee   :  { %v2152_v59 = vmax.f32 %v2151_v10, 0.0  ;;  %2155 = vst [vmem:[%s3948_s8] sm:$0xf0] %v2154_v35 }
 0x5f0   :  { %2153 = vst [vmem:[%s3948_s8] sm:$0xf] %v2152_v59 }

</bundles_post_ra>
